<compile_context>
chip_gen: v7x
topology: tpu7x:2x2x1
jax: 0.10.0
libtpu: 0.0.40
codegen_flags: <defaults>
</compile_context>

<pallas_src>
import math
import functools

import jax
import jax.numpy as jnp
from jax.experimental import pallas as pl
from jax.experimental.pallas import tpu as pltpu

_SQRT_2_OVER_PI = math.sqrt(2.0 / math.pi)

# MXU operand dtype (accumulation is always f32 via preferred_element_type; all
# elementwise math stays f32 on the VPU/EUP).
MXU_DTYPE = jnp.bfloat16


def _mm(a, w):
    """a @ w on the MXU; `a` is cast to the (bf16) weight dtype, f32 accumulation."""
    return jnp.dot(a.astype(w.dtype), w, preferred_element_type=jnp.float32)


# --------------------------- fused forward kernel ---------------------------

def _fused_sa_kernel(n_heads, eps, TB, V,
                     x_ref, kmask_ref,
                     slg_ref, slb_ref,
                     ln1g_ref, ln1b_ref, wqkv_ref, bqkv_ref, wo_ref, bo_ref,
                     ln2g_ref, ln2b_ref, w1_ref, b1_ref, w2_ref, b2_ref,
                     convw_ref, survw_ref, tailb_ref,
                     out_ref):
    """One grid step = TB batch elements; all intermediates stay on-chip."""
    E = x_ref.shape[-1]
    hd = E // n_heads
    scale = 1.0 / math.sqrt(hd)

    # Flatten the batch tile into one MXU-friendly row slab.
    x = x_ref[...].astype(jnp.float32).reshape(TB * V, E)          # (TB*V, E)

    def layernorm(t, g_ref, b_ref):
        mu = jnp.mean(t, axis=-1, keepdims=True)
        d = t - mu
        var = jnp.sum(d * d, axis=-1, keepdims=True) / (E - 1)     # torch .std(): unbiased
        return g_ref[...] * d / (jnp.sqrt(var) + eps) + b_ref[...]

    def gelu(t):   # BERT-pytorch tanh approximation
        return 0.5 * t * (1.0 + jnp.tanh(_SQRT_2_OVER_PI * (t + 0.044715 * t ** 3)))

    # SublayerConnection.norm(x) (outer sublayer; dropout = identity in eval)
    y = layernorm(x, slg_ref, slb_ref)

    # ---- TransformerBlock input sublayer: y + MHA(LN1(y), mask) ----
    yn = layernorm(y, ln1g_ref, ln1b_ref)
    qkv = _mm(yn, wqkv_ref[...]) + bqkv_ref[...]                   # fused QKV: (TB*V, 3E) f32
    qkv = qkv.reshape(TB, V, 3 * E)
    q, k, v = qkv[:, :, :E], qkv[:, :, E:2 * E], qkv[:, :, 2 * E:]

    # Additive attention bias built in-kernel from the (TB, 1, V) key-validity
    # vector (padding-only mask, broadcast over queries; kept in f32).
    bias = jnp.where(kmask_ref[...] > 0.0, 0.0, -1e9)              # (TB, 1, V)

    # Per-head attention via static lane slices (head-sized contractions only).
    ctx_heads = []
    for h in range(n_heads):                                       # static unroll, small H
        sl = slice(h * hd, (h + 1) * hd)
        qh = q[:, :, sl].astype(MXU_DTYPE)
        kh = k[:, :, sl].astype(MXU_DTYPE)
        vh = v[:, :, sl].astype(MXU_DTYPE)
        s = jnp.einsum('bqd,bkd->bqk', qh, kh,
                       preferred_element_type=jnp.float32) * scale + bias   # (TB, V, V)
        s = s - jnp.max(s, axis=-1, keepdims=True)
        p = jnp.exp(s)
        p = p * pl.reciprocal(jnp.sum(p, axis=-1, keepdims=True), approx=True)  # EUP
        ctx_heads.append(jnp.einsum('bqk,bkd->bqd', p.astype(MXU_DTYPE), vh,
                                    preferred_element_type=jnp.float32))    # (TB, V, hd)
    ctx = jnp.concatenate(ctx_heads, axis=-1).reshape(TB * V, E)

    attn = _mm(ctx, wo_ref[...]) + bo_ref[...]
    h1 = y + attn                                                  # input-sublayer residual

    # ---- TransformerBlock output sublayer: h1 + FFN(LN2(h1)) ----
    hn = layernorm(h1, ln2g_ref, ln2b_ref)
    ff = gelu(_mm(hn, w1_ref[...]) + b1_ref[...])
    ff = _mm(ff, w2_ref[...]) + b2_ref[...]
    pooled = x + (h1 + ff)                                         # outer residual; (TB*V, E)

    # ---- classifier tail, reassociated: conv_w @ (pooled @ surv_w) + fused_bias ----
    tmp = _mm(pooled, survw_ref[...]).reshape(TB, V, -1)           # (TB, V, n_targets)
    for b in range(TB):                                            # static, tiny
        logits = jnp.dot(convw_ref[...], tmp[b].astype(MXU_DTYPE),
                         preferred_element_type=jnp.float32) + tailb_ref[...]   # (T, n)
        out_ref[b] = jax.nn.sigmoid(logits).astype(out_ref.dtype)


# ------------------------------- model glue --------------------------------

def _pick_tb(B, V, target_rows=256):
    """Batch-tile size: smallest divisor of B with TB*V >= target_rows (capped at B)."""
    want = min(B, max(1, -(-target_rows // max(V, 1))))            # ceil(target/V)
    tb = want
    while B % tb:
        tb -= 1
    return max(tb, 1)


def sa_forward(x, m, params):
    B, V, E = x.shape
    H = params["n_heads"]

    # Reference loop `for tf, sl in zip(tfs, sublayers): pooled = sl(x, lambda x: tf(x, m))`
    # restarts from the ORIGINAL x every iteration and overwrites `pooled`; only the
    # final (tf, sublayer) pair determines the result, so we compute just that pair
    # (bit-identical output, depth-fold less work).
    layer = params["tfs"][-1]
    slg, slb = params["sl_g"][-1], params["sl_b"][-1]
    conv_w, conv_b = params["conv_w"], params["conv_b"]
    surv_w, surv_b = params["surv_w"], params["surv_b"]
    T = conv_w.shape[0]
    n_targets = surv_w.shape[1]
    d_ff = layer["w1"].shape[1]

    # (B, 1, V) key-validity vector instead of a (B, V, V) f32 additive bias in HBM.
    # TODO(synk): assumes the padding mask is query-independent (backwards_attn=False);
    #   an arbitrary (B, 1, V, V) mask would need the full per-batch bias input back.
    key_valid = m.reshape(B, V, V)[:, :1, :].astype(jnp.float32)   # (B, 1, V)

    # Fold Conv1d + surv_encoder biases into one (T, n_targets) bias for the
    # reassociated tail:  (conv_w@pooled + conv_b) @ surv_w + surv_b
    #                   = conv_w @ (pooled @ surv_w) + conv_b * colsum(surv_w) + surv_b.
    tail_b = (conv_b[:, None] * jnp.sum(surv_w, axis=0)[None, :]
              + surv_b[None, :]).astype(jnp.float32)               # (T, n_targets)

    bf16 = lambda w: w.astype(MXU_DTYPE)

    TB = _pick_tb(B, V)
    kernel = functools.partial(_fused_sa_kernel, H, 1e-6, TB, V)
    const = lambda shape: pl.BlockSpec(shape, lambda b, _s=shape: tuple(0 for _ in _s))

    surv_pred = pl.pallas_call(
        kernel,
        out_shape=jax.ShapeDtypeStruct((B, T, n_targets), jnp.float32),
        grid=(B // TB,),
        in_specs=[
            pl.BlockSpec((TB, V, E), lambda b: (b, 0, 0)),   # x (batch tile)
            pl.BlockSpec((TB, 1, V), lambda b: (b, 0, 0)),   # key-validity mask
            const((1, E)), const((1, E)),                    # SublayerConnection LN
            const((1, E)), const((1, E)),                    # LN1
            const((E, 3 * E)), const((1, 3 * E)),            # fused QKV (bf16 W)
            const((E, E)), const((1, E)),                    # output projection (bf16 W)
            const((1, E)), const((1, E)),                    # LN2
            const((E, d_ff)), const((1, d_ff)),              # FFN 1 (bf16 W)
            const((d_ff, E)), const((1, E)),                 # FFN 2 (bf16 W)
            const((T, V)),                                   # Conv1d(V -> T, k=1) weight
            const((E, n_targets)),                           # surv_encoder weight
            const((T, n_targets)),                           # fused conv+surv bias
        ],
        out_specs=pl.BlockSpec((TB, T, n_targets), lambda b: (b, 0, 0)),
        compiler_params=pltpu.CompilerParams(
            dimension_semantics=("parallel",),               # megacore splits batch tiles
            vmem_limit_bytes=48 * 1024 * 1024),
    )(
        x, key_valid,
        slg.reshape(1, E), slb.reshape(1, E),
        layer["ln1_g"].reshape(1, E), layer["ln1_b"].reshape(1, E),
        bf16(layer["wqkv"]), layer["bqkv"].reshape(1, 3 * E),
        bf16(layer["wo"]), layer["bo"].reshape(1, E),
        layer["ln2_g"].reshape(1, E), layer["ln2_b"].reshape(1, E),
        bf16(layer["w1"]), layer["b1"].reshape(1, d_ff),
        bf16(layer["w2"]), layer["b2"].reshape(1, E),
        bf16(conv_w),
        bf16(surv_w),
        tail_b,
    )
    return surv_pred, None


def init_params(key, E, H, T, V, d_ff, depth, n_targets):
    def nrm(k, shape, scale=0.02):
        return scale * jax.random.normal(k, shape, jnp.float32)

    keys = iter(jax.random.split(key, 16 * depth + 16))
    tfs, sl_g, sl_b = [], [], []
    for _ in range(depth):
        tfs.append(dict(
            wqkv=nrm(next(keys), (E, 3 * E)), bqkv=nrm(next(keys), (3 * E,)),
            wo=nrm(next(keys), (E, E)), bo=nrm(next(keys), (E,)),
            w1=nrm(next(keys), (E, d_ff)), b1=nrm(next(keys), (d_ff,)),
            w2=nrm(next(keys), (d_ff, E)), b2=nrm(next(keys), (E,)),
            ln1_g=jnp.ones((E,), jnp.float32), ln1_b=jnp.zeros((E,), jnp.float32),
            ln2_g=jnp.ones((E,), jnp.float32), ln2_b=jnp.zeros((E,), jnp.float32),
        ))
        sl_g.append(jnp.ones((E,), jnp.float32))
        sl_b.append(jnp.zeros((E,), jnp.float32))
    return dict(
        tfs=tfs, sl_g=sl_g, sl_b=sl_b, n_heads=H,
        conv_w=nrm(next(keys), (T, V)), conv_b=nrm(next(keys), (T,)),   # Conv1d(V->T, k=1)
        surv_w=nrm(next(keys), (E, n_targets)), surv_b=nrm(next(keys), (n_targets,)),
    )


if __name__ == "__main__":
    B, V, E, H, T = 2, 8, 32, 4, 16          # batch, max_visits, emb_size, n_heads, max_time
    D_FF, DEPTH, N_TARGETS = 4 * E, 2, 1

    key = jax.random.PRNGKey(0)
    k_x, k_p = jax.random.split(key)
    x = jax.random.normal(k_x, (B, V, E), jnp.float32)

    # mask m: (B, 1, V, V), 1 where the key-visit exists (batch 0: 8 visits, batch 1: 6)
    lens = jnp.array([8, 6], jnp.int32)
    valid = (jnp.arange(V)[None, :] < lens[:, None]).astype(jnp.float32)   # (B, V)
    m = jnp.broadcast_to(valid[:, None, None, :], (B, 1, V, V))

    params = init_params(k_p, E, H, T, V, D_FF, DEPTH, N_TARGETS)

    surv_pred, aux = sa_forward(x, m, params)
    surv_pred = jax.block_until_ready(surv_pred)
    assert surv_pred.shape == (B, T, N_TARGETS)
    assert aux is None
    assert bool(jnp.all(jnp.isfinite(surv_pred)))
    print("KERNEL_OK")
</pallas_src>

<mosaic_0001>
module attributes {stable_mosaic.version = 11 : i64} {
  func.func @_fused_sa_kernel(%arg0: i32, %arg1: memref<2x8x32xf32, #tpu.memory_space<vmem>>, %arg2: memref<2x1x8xf32, #tpu.memory_space<vmem>>, %arg3: memref<1x32xf32, #tpu.memory_space<vmem>>, %arg4: memref<1x32xf32, #tpu.memory_space<vmem>>, %arg5: memref<1x32xf32, #tpu.memory_space<vmem>>, %arg6: memref<1x32xf32, #tpu.memory_space<vmem>>, %arg7: memref<32x96xbf16, #tpu.memory_space<vmem>>, %arg8: memref<1x96xf32, #tpu.memory_space<vmem>>, %arg9: memref<32x32xbf16, #tpu.memory_space<vmem>>, %arg10: memref<1x32xf32, #tpu.memory_space<vmem>>, %arg11: memref<1x32xf32, #tpu.memory_space<vmem>>, %arg12: memref<1x32xf32, #tpu.memory_space<vmem>>, %arg13: memref<32x128xbf16, #tpu.memory_space<vmem>>, %arg14: memref<1x128xf32, #tpu.memory_space<vmem>>, %arg15: memref<128x32xbf16, #tpu.memory_space<vmem>>, %arg16: memref<1x32xf32, #tpu.memory_space<vmem>>, %arg17: memref<16x8xbf16, #tpu.memory_space<vmem>>, %arg18: memref<32x1xbf16, #tpu.memory_space<vmem>>, %arg19: memref<16x1xf32, #tpu.memory_space<vmem>>, %arg20: memref<2x16x1xf32, #tpu.memory_space<vmem>>) attributes {dimension_semantics = [#tpu.dimension_semantics<parallel>], iteration_bounds = array<i64: 1>, scalar_prefetch = 0 : i64, scratch_operands = 0 : i64, tpu.core_type = #tpu.core_type<tc>, window_params = [{transform_indices = @transform_0, window_bounds = array<i64: 2, 8, 32>}, {transform_indices = @transform_1, window_bounds = array<i64: 2, 1, 8>}, {pipeline_mode = #tpu.pipeline_mode<synchronous>, transform_indices = @transform_2, window_bounds = array<i64: 1, 32>}, {pipeline_mode = #tpu.pipeline_mode<synchronous>, transform_indices = @transform_3, window_bounds = array<i64: 1, 32>}, {pipeline_mode = #tpu.pipeline_mode<synchronous>, transform_indices = @transform_4, window_bounds = array<i64: 1, 32>}, {pipeline_mode = #tpu.pipeline_mode<synchronous>, transform_indices = @transform_5, window_bounds = array<i64: 1, 32>}, {pipeline_mode = #tpu.pipeline_mode<synchronous>, transform_indices = @transform_6, window_bounds = array<i64: 32, 96>}, {pipeline_mode = #tpu.pipeline_mode<synchronous>, transform_indices = @transform_7, window_bounds = array<i64: 1, 96>}, {pipeline_mode = #tpu.pipeline_mode<synchronous>, transform_indices = @transform_8, window_bounds = array<i64: 32, 32>}, {pipeline_mode = #tpu.pipeline_mode<synchronous>, transform_indices = @transform_9, window_bounds = array<i64: 1, 32>}, {pipeline_mode = #tpu.pipeline_mode<synchronous>, transform_indices = @transform_10, window_bounds = array<i64: 1, 32>}, {pipeline_mode = #tpu.pipeline_mode<synchronous>, transform_indices = @transform_11, window_bounds = array<i64: 1, 32>}, {pipeline_mode = #tpu.pipeline_mode<synchronous>, transform_indices = @transform_12, window_bounds = array<i64: 32, 128>}, {pipeline_mode = #tpu.pipeline_mode<synchronous>, transform_indices = @transform_13, window_bounds = array<i64: 1, 128>}, {pipeline_mode = #tpu.pipeline_mode<synchronous>, transform_indices = @transform_14, window_bounds = array<i64: 128, 32>}, {pipeline_mode = #tpu.pipeline_mode<synchronous>, transform_indices = @transform_15, window_bounds = array<i64: 1, 32>}, {pipeline_mode = #tpu.pipeline_mode<synchronous>, transform_indices = @transform_16, window_bounds = array<i64: 16, 8>}, {pipeline_mode = #tpu.pipeline_mode<synchronous>, transform_indices = @transform_17, window_bounds = array<i64: 32, 1>}, {pipeline_mode = #tpu.pipeline_mode<synchronous>, transform_indices = @transform_18, window_bounds = array<i64: 16, 1>}, {transform_indices = @transform_19, window_bounds = array<i64: 2, 16, 1>}]} {
    %c0 = arith.constant 0 : index
    %c0_0 = arith.constant 0 : index
    %c0_1 = arith.constant 0 : index
    %0 = vector.load %arg1[%c0, %c0_0, %c0_1] : memref<2x8x32xf32, #tpu.memory_space<vmem>>, vector<2x8x32xf32>
    %1 = vector.shape_cast %0 : vector<2x8x32xf32> to vector<16x32xf32>
    %cst = arith.constant dense<0.000000e+00> : vector<16xf32>
    %2 = vector.multi_reduction <add>, %1, %cst [1] : vector<16x32xf32> to vector<16xf32>
    %3 = vector.shape_cast %2 : vector<16xf32> to vector<16x1xf32>
    %cst_2 = arith.constant 3.200000e+01 : f32
    %4 = vector.broadcast %cst_2 : f32 to vector<16x1xf32>
    %5 = arith.divf %3, %4 : vector<16x1xf32>
    %6 = vector.broadcast %5 : vector<16x1xf32> to vector<16x32xf32>
    %7 = arith.subf %1, %6 : vector<16x32xf32>
    %8 = arith.mulf %7, %7 : vector<16x32xf32>
    %cst_3 = arith.constant dense<0.000000e+00> : vector<16xf32>
    %9 = vector.multi_reduction <add>, %8, %cst_3 [1] : vector<16x32xf32> to vector<16xf32>
    %10 = vector.shape_cast %9 : vector<16xf32> to vector<16x1xf32>
    %cst_4 = arith.constant 3.100000e+01 : f32
    %11 = vector.broadcast %cst_4 : f32 to vector<16x1xf32>
    %12 = arith.divf %10, %11 : vector<16x1xf32>
    %c0_5 = arith.constant 0 : index
    %c0_6 = arith.constant 0 : index
    %13 = vector.load %arg3[%c0_5, %c0_6] : memref<1x32xf32, #tpu.memory_space<vmem>>, vector<1x32xf32>
    %14 = vector.broadcast %13 : vector<1x32xf32> to vector<16x32xf32>
    %15 = arith.mulf %14, %7 : vector<16x32xf32>
    %16 = math.sqrt %12 : vector<16x1xf32>
    %cst_7 = arith.constant 9.99999997E-7 : f32
    %17 = vector.broadcast %cst_7 : f32 to vector<16x1xf32>
    %18 = arith.addf %16, %17 : vector<16x1xf32>
    %19 = vector.broadcast %18 : vector<16x1xf32> to vector<16x32xf32>
    %20 = arith.divf %15, %19 : vector<16x32xf32>
    %c0_8 = arith.constant 0 : index
    %c0_9 = arith.constant 0 : index
    %21 = vector.load %arg4[%c0_8, %c0_9] : memref<1x32xf32, #tpu.memory_space<vmem>>, vector<1x32xf32>
    %22 = vector.broadcast %21 : vector<1x32xf32> to vector<16x32xf32>
    %23 = arith.addf %20, %22 : vector<16x32xf32>
    %cst_10 = arith.constant dense<0.000000e+00> : vector<16xf32>
    %24 = vector.multi_reduction <add>, %23, %cst_10 [1] : vector<16x32xf32> to vector<16xf32>
    %25 = vector.shape_cast %24 : vector<16xf32> to vector<16x1xf32>
    %cst_11 = arith.constant 3.200000e+01 : f32
    %26 = vector.broadcast %cst_11 : f32 to vector<16x1xf32>
    %27 = arith.divf %25, %26 : vector<16x1xf32>
    %28 = vector.broadcast %27 : vector<16x1xf32> to vector<16x32xf32>
    %29 = arith.subf %23, %28 : vector<16x32xf32>
    %30 = arith.mulf %29, %29 : vector<16x32xf32>
    %cst_12 = arith.constant dense<0.000000e+00> : vector<16xf32>
    %31 = vector.multi_reduction <add>, %30, %cst_12 [1] : vector<16x32xf32> to vector<16xf32>
    %32 = vector.shape_cast %31 : vector<16xf32> to vector<16x1xf32>
    %cst_13 = arith.constant 3.100000e+01 : f32
    %33 = vector.broadcast %cst_13 : f32 to vector<16x1xf32>
    %34 = arith.divf %32, %33 : vector<16x1xf32>
    %c0_14 = arith.constant 0 : index
    %c0_15 = arith.constant 0 : index
    %35 = vector.load %arg5[%c0_14, %c0_15] : memref<1x32xf32, #tpu.memory_space<vmem>>, vector<1x32xf32>
    %36 = vector.broadcast %35 : vector<1x32xf32> to vector<16x32xf32>
    %37 = arith.mulf %36, %29 : vector<16x32xf32>
    %38 = math.sqrt %34 : vector<16x1xf32>
    %cst_16 = arith.constant 9.99999997E-7 : f32
    %39 = vector.broadcast %cst_16 : f32 to vector<16x1xf32>
    %40 = arith.addf %38, %39 : vector<16x1xf32>
    %41 = vector.broadcast %40 : vector<16x1xf32> to vector<16x32xf32>
    %42 = arith.divf %37, %41 : vector<16x32xf32>
    %c0_17 = arith.constant 0 : index
    %c0_18 = arith.constant 0 : index
    %43 = vector.load %arg6[%c0_17, %c0_18] : memref<1x32xf32, #tpu.memory_space<vmem>>, vector<1x32xf32>
    %44 = vector.broadcast %43 : vector<1x32xf32> to vector<16x32xf32>
    %45 = arith.addf %42, %44 : vector<16x32xf32>
    %c0_19 = arith.constant 0 : index
    %c0_20 = arith.constant 0 : index
    %46 = vector.load %arg7[%c0_19, %c0_20] : memref<32x96xbf16, #tpu.memory_space<vmem>>, vector<32x96xbf16>
    %47 = arith.truncf %45 : vector<16x32xf32> to vector<16x32xbf16>
    %cst_21 = arith.constant dense<0.000000e+00> : vector<16x96xf32>
    %48 = tpu.matmul %47, %46, %cst_21 {dimension_numbers = #tpu.dot_dimension_numbers<[1], [0], [0], [1], [0, 0, 1, 1], [], []>} : vector<16x32xbf16>, vector<32x96xbf16>, vector<16x96xf32> -> vector<16x96xf32>
    %c0_22 = arith.constant 0 : index
    %c0_23 = arith.constant 0 : index
    %49 = vector.load %arg8[%c0_22, %c0_23] : memref<1x96xf32, #tpu.memory_space<vmem>>, vector<1x96xf32>
    %50 = vector.broadcast %49 : vector<1x96xf32> to vector<16x96xf32>
    %51 = arith.addf %48, %50 : vector<16x96xf32>
    %52 = vector.shape_cast %51 : vector<16x96xf32> to vector<2x8x96xf32>
    %53 = vector.extract_strided_slice %52 {offsets = [0, 0, 0], sizes = [2, 8, 32], strides = [1, 1, 1]} : vector<2x8x96xf32> to vector<2x8x32xf32>
    %54 = vector.extract_strided_slice %52 {offsets = [0, 0, 32], sizes = [2, 8, 32], strides = [1, 1, 1]} : vector<2x8x96xf32> to vector<2x8x32xf32>
    %55 = vector.extract_strided_slice %52 {offsets = [0, 0, 64], sizes = [2, 8, 32], strides = [1, 1, 1]} : vector<2x8x96xf32> to vector<2x8x32xf32>
    %c0_24 = arith.constant 0 : index
    %c0_25 = arith.constant 0 : index
    %c0_26 = arith.constant 0 : index
    %56 = vector.load %arg2[%c0_24, %c0_25, %c0_26] : memref<2x1x8xf32, #tpu.memory_space<vmem>>, vector<2x1x8xf32>
    %cst_27 = arith.constant 0.000000e+00 : f32
    %57 = vector.broadcast %cst_27 : f32 to vector<2x1x8xf32>
    %58 = arith.cmpf ogt, %56, %57 : vector<2x1x8xf32>
    %cst_28 = arith.constant 0.000000e+00 : f32
    %cst_29 = arith.constant -1.000000e+09 : f32
    %59 = vector.broadcast %cst_28 : f32 to vector<2x1x8xf32>
    %60 = vector.broadcast %cst_29 : f32 to vector<2x1x8xf32>
    %61 = arith.select %58, %59, %60 : vector<2x1x8xi1>, vector<2x1x8xf32>
    %62 = vector.extract_strided_slice %53 {offsets = [0, 0, 0], sizes = [2, 8, 8], strides = [1, 1, 1]} : vector<2x8x32xf32> to vector<2x8x8xf32>
    %63 = arith.truncf %62 : vector<2x8x8xf32> to vector<2x8x8xbf16>
    %64 = vector.extract_strided_slice %54 {offsets = [0, 0, 0], sizes = [2, 8, 8], strides = [1, 1, 1]} : vector<2x8x32xf32> to vector<2x8x8xf32>
    %65 = arith.truncf %64 : vector<2x8x8xf32> to vector<2x8x8xbf16>
    %66 = vector.extract_strided_slice %55 {offsets = [0, 0, 0], sizes = [2, 8, 8], strides = [1, 1, 1]} : vector<2x8x32xf32> to vector<2x8x8xf32>
    %67 = arith.truncf %66 : vector<2x8x8xf32> to vector<2x8x8xbf16>
    "tpu.trace_start"() <{level = 10 : i32, message = "bqd,bkd->bqk"}> : () -> ()
    %cst_30 = arith.constant dense<0.000000e+00> : vector<2x8x8xf32>
    %68 = tpu.matmul %63, %65, %cst_30 {dimension_numbers = #tpu.dot_dimension_numbers<[2], [2], [1], [1], [0, 0, 0, 1, 1, 1], [0], [0]>} : vector<2x8x8xbf16>, vector<2x8x8xbf16>, vector<2x8x8xf32> -> vector<2x8x8xf32>
    "tpu.trace_stop"() : () -> ()
    %cst_31 = arith.constant 0.353553385 : f32
    %69 = vector.broadcast %cst_31 : f32 to vector<2x8x8xf32>
    %70 = arith.mulf %68, %69 : vector<2x8x8xf32>
    %71 = vector.broadcast %61 : vector<2x1x8xf32> to vector<2x8x8xf32>
    %72 = arith.addf %70, %71 : vector<2x8x8xf32>
    %cst_32 = arith.constant dense<0xFF800000> : vector<2x8xf32>
    %73 = vector.multi_reduction <maximumf>, %72, %cst_32 [2] : vector<2x8x8xf32> to vector<2x8xf32>
    %74 = vector.shape_cast %73 : vector<2x8xf32> to vector<2x8x1xf32>
    %75 = vector.broadcast %74 : vector<2x8x1xf32> to vector<2x8x8xf32>
    %76 = arith.subf %72, %75 : vector<2x8x8xf32>
    %77 = math.exp %76 : vector<2x8x8xf32>
    %cst_33 = arith.constant dense<0.000000e+00> : vector<2x8xf32>
    %78 = vector.multi_reduction <add>, %77, %cst_33 [2] : vector<2x8x8xf32> to vector<2x8xf32>
    %79 = vector.shape_cast %78 : vector<2x8xf32> to vector<2x8x1xf32>
    %80 = tpu.reciprocal %79 {approx = true} : vector<2x8x1xf32> -> vector<2x8x1xf32>
    %81 = vector.broadcast %80 : vector<2x8x1xf32> to vector<2x8x8xf32>
    %82 = arith.mulf %77, %81 : vector<2x8x8xf32>
    %83 = arith.truncf %82 : vector<2x8x8xf32> to vector<2x8x8xbf16>
    "tpu.trace_start"() <{level = 10 : i32, message = "bqk,bkd->bqd"}> : () -> ()
    %cst_34 = arith.constant dense<0.000000e+00> : vector<2x8x8xf32>
    %84 = tpu.matmul %83, %67, %cst_34 {dimension_numbers = #tpu.dot_dimension_numbers<[2], [1], [1], [2], [0, 0, 0, 1, 1, 2], [0], [0]>} : vector<2x8x8xbf16>, vector<2x8x8xbf16>, vector<2x8x8xf32> -> vector<2x8x8xf32>
    "tpu.trace_stop"() : () -> ()
    %85 = vector.extract_strided_slice %53 {offsets = [0, 0, 8], sizes = [2, 8, 8], strides = [1, 1, 1]} : vector<2x8x32xf32> to vector<2x8x8xf32>
    %86 = arith.truncf %85 : vector<2x8x8xf32> to vector<2x8x8xbf16>
    %87 = vector.extract_strided_slice %54 {offsets = [0, 0, 8], sizes = [2, 8, 8], strides = [1, 1, 1]} : vector<2x8x32xf32> to vector<2x8x8xf32>
    %88 = arith.truncf %87 : vector<2x8x8xf32> to vector<2x8x8xbf16>
    %89 = vector.extract_strided_slice %55 {offsets = [0, 0, 8], sizes = [2, 8, 8], strides = [1, 1, 1]} : vector<2x8x32xf32> to vector<2x8x8xf32>
    %90 = arith.truncf %89 : vector<2x8x8xf32> to vector<2x8x8xbf16>
    "tpu.trace_start"() <{level = 10 : i32, message = "bqd,bkd->bqk"}> : () -> ()
    %cst_35 = arith.constant dense<0.000000e+00> : vector<2x8x8xf32>
    %91 = tpu.matmul %86, %88, %cst_35 {dimension_numbers = #tpu.dot_dimension_numbers<[2], [2], [1], [1], [0, 0, 0, 1, 1, 1], [0], [0]>} : vector<2x8x8xbf16>, vector<2x8x8xbf16>, vector<2x8x8xf32> -> vector<2x8x8xf32>
    "tpu.trace_stop"() : () -> ()
    %cst_36 = arith.constant 0.353553385 : f32
    %92 = vector.broadcast %cst_36 : f32 to vector<2x8x8xf32>
    %93 = arith.mulf %91, %92 : vector<2x8x8xf32>
    %94 = vector.broadcast %61 : vector<2x1x8xf32> to vector<2x8x8xf32>
    %95 = arith.addf %93, %94 : vector<2x8x8xf32>
    %cst_37 = arith.constant dense<0xFF800000> : vector<2x8xf32>
    %96 = vector.multi_reduction <maximumf>, %95, %cst_37 [2] : vector<2x8x8xf32> to vector<2x8xf32>
    %97 = vector.shape_cast %96 : vector<2x8xf32> to vector<2x8x1xf32>
    %98 = vector.broadcast %97 : vector<2x8x1xf32> to vector<2x8x8xf32>
    %99 = arith.subf %95, %98 : vector<2x8x8xf32>
    %100 = math.exp %99 : vector<2x8x8xf32>
    %cst_38 = arith.constant dense<0.000000e+00> : vector<2x8xf32>
    %101 = vector.multi_reduction <add>, %100, %cst_38 [2] : vector<2x8x8xf32> to vector<2x8xf32>
    %102 = vector.shape_cast %101 : vector<2x8xf32> to vector<2x8x1xf32>
    %103 = tpu.reciprocal %102 {approx = true} : vector<2x8x1xf32> -> vector<2x8x1xf32>
    %104 = vector.broadcast %103 : vector<2x8x1xf32> to vector<2x8x8xf32>
    %105 = arith.mulf %100, %104 : vector<2x8x8xf32>
    %106 = arith.truncf %105 : vector<2x8x8xf32> to vector<2x8x8xbf16>
    "tpu.trace_start"() <{level = 10 : i32, message = "bqk,bkd->bqd"}> : () -> ()
    %cst_39 = arith.constant dense<0.000000e+00> : vector<2x8x8xf32>
    %107 = tpu.matmul %106, %90, %cst_39 {dimension_numbers = #tpu.dot_dimension_numbers<[2], [1], [1], [2], [0, 0, 0, 1, 1, 2], [0], [0]>} : vector<2x8x8xbf16>, vector<2x8x8xbf16>, vector<2x8x8xf32> -> vector<2x8x8xf32>
    "tpu.trace_stop"() : () -> ()
    %108 = vector.extract_strided_slice %53 {offsets = [0, 0, 16], sizes = [2, 8, 8], strides = [1, 1, 1]} : vector<2x8x32xf32> to vector<2x8x8xf32>
    %109 = arith.truncf %108 : vector<2x8x8xf32> to vector<2x8x8xbf16>
    %110 = vector.extract_strided_slice %54 {offsets = [0, 0, 16], sizes = [2, 8, 8], strides = [1, 1, 1]} : vector<2x8x32xf32> to vector<2x8x8xf32>
    %111 = arith.truncf %110 : vector<2x8x8xf32> to vector<2x8x8xbf16>
    %112 = vector.extract_strided_slice %55 {offsets = [0, 0, 16], sizes = [2, 8, 8], strides = [1, 1, 1]} : vector<2x8x32xf32> to vector<2x8x8xf32>
    %113 = arith.truncf %112 : vector<2x8x8xf32> to vector<2x8x8xbf16>
    "tpu.trace_start"() <{level = 10 : i32, message = "bqd,bkd->bqk"}> : () -> ()
    %cst_40 = arith.constant dense<0.000000e+00> : vector<2x8x8xf32>
    %114 = tpu.matmul %109, %111, %cst_40 {dimension_numbers = #tpu.dot_dimension_numbers<[2], [2], [1], [1], [0, 0, 0, 1, 1, 1], [0], [0]>} : vector<2x8x8xbf16>, vector<2x8x8xbf16>, vector<2x8x8xf32> -> vector<2x8x8xf32>
    "tpu.trace_stop"() : () -> ()
    %cst_41 = arith.constant 0.353553385 : f32
    %115 = vector.broadcast %cst_41 : f32 to vector<2x8x8xf32>
    %116 = arith.mulf %114, %115 : vector<2x8x8xf32>
    %117 = vector.broadcast %61 : vector<2x1x8xf32> to vector<2x8x8xf32>
    %118 = arith.addf %116, %117 : vector<2x8x8xf32>
    %cst_42 = arith.constant dense<0xFF800000> : vector<2x8xf32>
    %119 = vector.multi_reduction <maximumf>, %118, %cst_42 [2] : vector<2x8x8xf32> to vector<2x8xf32>
    %120 = vector.shape_cast %119 : vector<2x8xf32> to vector<2x8x1xf32>
    %121 = vector.broadcast %120 : vector<2x8x1xf32> to vector<2x8x8xf32>
    %122 = arith.subf %118, %121 : vector<2x8x8xf32>
    %123 = math.exp %122 : vector<2x8x8xf32>
    %cst_43 = arith.constant dense<0.000000e+00> : vector<2x8xf32>
    %124 = vector.multi_reduction <add>, %123, %cst_43 [2] : vector<2x8x8xf32> to vector<2x8xf32>
    %125 = vector.shape_cast %124 : vector<2x8xf32> to vector<2x8x1xf32>
    %126 = tpu.reciprocal %125 {approx = true} : vector<2x8x1xf32> -> vector<2x8x1xf32>
    %127 = vector.broadcast %126 : vector<2x8x1xf32> to vector<2x8x8xf32>
    %128 = arith.mulf %123, %127 : vector<2x8x8xf32>
    %129 = arith.truncf %128 : vector<2x8x8xf32> to vector<2x8x8xbf16>
    "tpu.trace_start"() <{level = 10 : i32, message = "bqk,bkd->bqd"}> : () -> ()
    %cst_44 = arith.constant dense<0.000000e+00> : vector<2x8x8xf32>
    %130 = tpu.matmul %129, %113, %cst_44 {dimension_numbers = #tpu.dot_dimension_numbers<[2], [1], [1], [2], [0, 0, 0, 1, 1, 2], [0], [0]>} : vector<2x8x8xbf16>, vector<2x8x8xbf16>, vector<2x8x8xf32> -> vector<2x8x8xf32>
    "tpu.trace_stop"() : () -> ()
    %131 = vector.extract_strided_slice %53 {offsets = [0, 0, 24], sizes = [2, 8, 8], strides = [1, 1, 1]} : vector<2x8x32xf32> to vector<2x8x8xf32>
    %132 = arith.truncf %131 : vector<2x8x8xf32> to vector<2x8x8xbf16>
    %133 = vector.extract_strided_slice %54 {offsets = [0, 0, 24], sizes = [2, 8, 8], strides = [1, 1, 1]} : vector<2x8x32xf32> to vector<2x8x8xf32>
    %134 = arith.truncf %133 : vector<2x8x8xf32> to vector<2x8x8xbf16>
    %135 = vector.extract_strided_slice %55 {offsets = [0, 0, 24], sizes = [2, 8, 8], strides = [1, 1, 1]} : vector<2x8x32xf32> to vector<2x8x8xf32>
    %136 = arith.truncf %135 : vector<2x8x8xf32> to vector<2x8x8xbf16>
    "tpu.trace_start"() <{level = 10 : i32, message = "bqd,bkd->bqk"}> : () -> ()
    %cst_45 = arith.constant dense<0.000000e+00> : vector<2x8x8xf32>
    %137 = tpu.matmul %132, %134, %cst_45 {dimension_numbers = #tpu.dot_dimension_numbers<[2], [2], [1], [1], [0, 0, 0, 1, 1, 1], [0], [0]>} : vector<2x8x8xbf16>, vector<2x8x8xbf16>, vector<2x8x8xf32> -> vector<2x8x8xf32>
    "tpu.trace_stop"() : () -> ()
    %cst_46 = arith.constant 0.353553385 : f32
    %138 = vector.broadcast %cst_46 : f32 to vector<2x8x8xf32>
    %139 = arith.mulf %137, %138 : vector<2x8x8xf32>
    %140 = vector.broadcast %61 : vector<2x1x8xf32> to vector<2x8x8xf32>
    %141 = arith.addf %139, %140 : vector<2x8x8xf32>
    %cst_47 = arith.constant dense<0xFF800000> : vector<2x8xf32>
    %142 = vector.multi_reduction <maximumf>, %141, %cst_47 [2] : vector<2x8x8xf32> to vector<2x8xf32>
    %143 = vector.shape_cast %142 : vector<2x8xf32> to vector<2x8x1xf32>
    %144 = vector.broadcast %143 : vector<2x8x1xf32> to vector<2x8x8xf32>
    %145 = arith.subf %141, %144 : vector<2x8x8xf32>
    %146 = math.exp %145 : vector<2x8x8xf32>
    %cst_48 = arith.constant dense<0.000000e+00> : vector<2x8xf32>
    %147 = vector.multi_reduction <add>, %146, %cst_48 [2] : vector<2x8x8xf32> to vector<2x8xf32>
    %148 = vector.shape_cast %147 : vector<2x8xf32> to vector<2x8x1xf32>
    %149 = tpu.reciprocal %148 {approx = true} : vector<2x8x1xf32> -> vector<2x8x1xf32>
    %150 = vector.broadcast %149 : vector<2x8x1xf32> to vector<2x8x8xf32>
    %151 = arith.mulf %146, %150 : vector<2x8x8xf32>
    %152 = arith.truncf %151 : vector<2x8x8xf32> to vector<2x8x8xbf16>
    "tpu.trace_start"() <{level = 10 : i32, message = "bqk,bkd->bqd"}> : () -> ()
    %cst_49 = arith.constant dense<0.000000e+00> : vector<2x8x8xf32>
    %153 = tpu.matmul %152, %136, %cst_49 {dimension_numbers = #tpu.dot_dimension_numbers<[2], [1], [1], [2], [0, 0, 0, 1, 1, 2], [0], [0]>} : vector<2x8x8xbf16>, vector<2x8x8xbf16>, vector<2x8x8xf32> -> vector<2x8x8xf32>
    "tpu.trace_stop"() : () -> ()
    %154 = tpu.concatenate %84, %107, %130, %153 in 2 : vector<2x8x8xf32>, vector<2x8x8xf32>, vector<2x8x8xf32>, vector<2x8x8xf32> -> vector<2x8x32xf32>
    %155 = vector.shape_cast %154 : vector<2x8x32xf32> to vector<16x32xf32>
    %c0_50 = arith.constant 0 : index
    %c0_51 = arith.constant 0 : index
    %156 = vector.load %arg9[%c0_50, %c0_51] : memref<32x32xbf16, #tpu.memory_space<vmem>>, vector<32x32xbf16>
    %157 = arith.truncf %155 : vector<16x32xf32> to vector<16x32xbf16>
    %cst_52 = arith.constant dense<0.000000e+00> : vector<16x32xf32>
    %158 = tpu.matmul %157, %156, %cst_52 {dimension_numbers = #tpu.dot_dimension_numbers<[1], [0], [0], [1], [0, 0, 1, 1], [], []>} : vector<16x32xbf16>, vector<32x32xbf16>, vector<16x32xf32> -> vector<16x32xf32>
    %c0_53 = arith.constant 0 : index
    %c0_54 = arith.constant 0 : index
    %159 = vector.load %arg10[%c0_53, %c0_54] : memref<1x32xf32, #tpu.memory_space<vmem>>, vector<1x32xf32>
    %160 = vector.broadcast %159 : vector<1x32xf32> to vector<16x32xf32>
    %161 = arith.addf %158, %160 : vector<16x32xf32>
    %162 = arith.addf %23, %161 : vector<16x32xf32>
    %cst_55 = arith.constant dense<0.000000e+00> : vector<16xf32>
    %163 = vector.multi_reduction <add>, %162, %cst_55 [1] : vector<16x32xf32> to vector<16xf32>
    %164 = vector.shape_cast %163 : vector<16xf32> to vector<16x1xf32>
    %cst_56 = arith.constant 3.200000e+01 : f32
    %165 = vector.broadcast %cst_56 : f32 to vector<16x1xf32>
    %166 = arith.divf %164, %165 : vector<16x1xf32>
    %167 = vector.broadcast %166 : vector<16x1xf32> to vector<16x32xf32>
    %168 = arith.subf %162, %167 : vector<16x32xf32>
    %169 = arith.mulf %168, %168 : vector<16x32xf32>
    %cst_57 = arith.constant dense<0.000000e+00> : vector<16xf32>
    %170 = vector.multi_reduction <add>, %169, %cst_57 [1] : vector<16x32xf32> to vector<16xf32>
    %171 = vector.shape_cast %170 : vector<16xf32> to vector<16x1xf32>
    %cst_58 = arith.constant 3.100000e+01 : f32
    %172 = vector.broadcast %cst_58 : f32 to vector<16x1xf32>
    %173 = arith.divf %171, %172 : vector<16x1xf32>
    %c0_59 = arith.constant 0 : index
    %c0_60 = arith.constant 0 : index
    %174 = vector.load %arg11[%c0_59, %c0_60] : memref<1x32xf32, #tpu.memory_space<vmem>>, vector<1x32xf32>
    %175 = vector.broadcast %174 : vector<1x32xf32> to vector<16x32xf32>
    %176 = arith.mulf %175, %168 : vector<16x32xf32>
    %177 = math.sqrt %173 : vector<16x1xf32>
    %cst_61 = arith.constant 9.99999997E-7 : f32
    %178 = vector.broadcast %cst_61 : f32 to vector<16x1xf32>
    %179 = arith.addf %177, %178 : vector<16x1xf32>
    %180 = vector.broadcast %179 : vector<16x1xf32> to vector<16x32xf32>
    %181 = arith.divf %176, %180 : vector<16x32xf32>
    %c0_62 = arith.constant 0 : index
    %c0_63 = arith.constant 0 : index
    %182 = vector.load %arg12[%c0_62, %c0_63] : memref<1x32xf32, #tpu.memory_space<vmem>>, vector<1x32xf32>
    %183 = vector.broadcast %182 : vector<1x32xf32> to vector<16x32xf32>
    %184 = arith.addf %181, %183 : vector<16x32xf32>
    %c0_64 = arith.constant 0 : index
    %c0_65 = arith.constant 0 : index
    %185 = vector.load %arg13[%c0_64, %c0_65] : memref<32x128xbf16, #tpu.memory_space<vmem>>, vector<32x128xbf16>
    %186 = arith.truncf %184 : vector<16x32xf32> to vector<16x32xbf16>
    %cst_66 = arith.constant dense<0.000000e+00> : vector<16x128xf32>
    %187 = tpu.matmul %186, %185, %cst_66 {dimension_numbers = #tpu.dot_dimension_numbers<[1], [0], [0], [1], [0, 0, 1, 1], [], []>} : vector<16x32xbf16>, vector<32x128xbf16>, vector<16x128xf32> -> vector<16x128xf32>
    %c0_67 = arith.constant 0 : index
    %c0_68 = arith.constant 0 : index
    %188 = vector.load %arg14[%c0_67, %c0_68] : memref<1x128xf32, #tpu.memory_space<vmem>>, vector<1x128xf32>
    %189 = vector.broadcast %188 : vector<1x128xf32> to vector<16x128xf32>
    %190 = arith.addf %187, %189 : vector<16x128xf32>
    %cst_69 = arith.constant 5.000000e-01 : f32
    %191 = vector.broadcast %cst_69 : f32 to vector<16x128xf32>
    %192 = arith.mulf %191, %190 : vector<16x128xf32>
    %193 = arith.mulf %190, %190 : vector<16x128xf32>
    %194 = arith.mulf %190, %193 : vector<16x128xf32>
    %cst_70 = arith.constant 4.471500e-02 : f32
    %195 = vector.broadcast %cst_70 : f32 to vector<16x128xf32>
    %196 = arith.mulf %195, %194 : vector<16x128xf32>
    %197 = arith.addf %190, %196 : vector<16x128xf32>
    %cst_71 = arith.constant 0.797884583 : f32
    %198 = vector.broadcast %cst_71 : f32 to vector<16x128xf32>
    %199 = arith.mulf %198, %197 : vector<16x128xf32>
    %200 = math.tanh %199 : vector<16x128xf32>
    %cst_72 = arith.constant 1.000000e+00 : f32
    %201 = vector.broadcast %cst_72 : f32 to vector<16x128xf32>
    %202 = arith.addf %201, %200 : vector<16x128xf32>
    %203 = arith.mulf %192, %202 : vector<16x128xf32>
    %c0_73 = arith.constant 0 : index
    %c0_74 = arith.constant 0 : index
    %204 = vector.load %arg15[%c0_73, %c0_74] : memref<128x32xbf16, #tpu.memory_space<vmem>>, vector<128x32xbf16>
    %205 = arith.truncf %203 : vector<16x128xf32> to vector<16x128xbf16>
    %cst_75 = arith.constant dense<0.000000e+00> : vector<16x32xf32>
    %206 = tpu.matmul %205, %204, %cst_75 {dimension_numbers = #tpu.dot_dimension_numbers<[1], [0], [0], [1], [0, 0, 1, 1], [], []>} : vector<16x128xbf16>, vector<128x32xbf16>, vector<16x32xf32> -> vector<16x32xf32>
    %c0_76 = arith.constant 0 : index
    %c0_77 = arith.constant 0 : index
    %207 = vector.load %arg16[%c0_76, %c0_77] : memref<1x32xf32, #tpu.memory_space<vmem>>, vector<1x32xf32>
    %208 = vector.broadcast %207 : vector<1x32xf32> to vector<16x32xf32>
    %209 = arith.addf %206, %208 : vector<16x32xf32>
    %210 = arith.addf %162, %209 : vector<16x32xf32>
    %211 = arith.addf %1, %210 : vector<16x32xf32>
    %c0_78 = arith.constant 0 : index
    %c0_79 = arith.constant 0 : index
    %212 = vector.load %arg18[%c0_78, %c0_79] : memref<32x1xbf16, #tpu.memory_space<vmem>>, vector<32x1xbf16>
    %213 = arith.truncf %211 : vector<16x32xf32> to vector<16x32xbf16>
    %cst_80 = arith.constant dense<0.000000e+00> : vector<16x1xf32>
    %214 = tpu.matmul %213, %212, %cst_80 {dimension_numbers = #tpu.dot_dimension_numbers<[1], [0], [0], [1], [0, 0, 1, 1], [], []>} : vector<16x32xbf16>, vector<32x1xbf16>, vector<16x1xf32> -> vector<16x1xf32>
    %215 = vector.shape_cast %214 : vector<16x1xf32> to vector<2x8x1xf32>
    %c0_81 = arith.constant 0 : index
    %c0_82 = arith.constant 0 : index
    %216 = vector.load %arg17[%c0_81, %c0_82] : memref<16x8xbf16, #tpu.memory_space<vmem>>, vector<16x8xbf16>
    %217 = vector.extract_strided_slice %215 {offsets = [0, 0, 0], sizes = [1, 8, 1], strides = [1, 1, 1]} : vector<2x8x1xf32> to vector<1x8x1xf32>
    %218 = vector.shape_cast %217 : vector<1x8x1xf32> to vector<8x1xf32>
    %219 = arith.truncf %218 : vector<8x1xf32> to vector<8x1xbf16>
    %cst_83 = arith.constant dense<0.000000e+00> : vector<16x1xf32>
    %220 = tpu.matmul %216, %219, %cst_83 {dimension_numbers = #tpu.dot_dimension_numbers<[1], [0], [0], [1], [0, 0, 1, 1], [], []>} : vector<16x8xbf16>, vector<8x1xbf16>, vector<16x1xf32> -> vector<16x1xf32>
    %c0_84 = arith.constant 0 : index
    %c0_85 = arith.constant 0 : index
    %221 = vector.load %arg19[%c0_84, %c0_85] : memref<16x1xf32, #tpu.memory_space<vmem>>, vector<16x1xf32>
    %222 = arith.addf %220, %221 : vector<16x1xf32>
    %223 = arith.negf %222 : vector<16x1xf32>
    %224 = math.exp %223 : vector<16x1xf32>
    %cst_86 = arith.constant 1.000000e+00 : f32
    %225 = vector.broadcast %cst_86 : f32 to vector<16x1xf32>
    %226 = arith.addf %225, %224 : vector<16x1xf32>
    %227 = arith.divf %225, %226 : vector<16x1xf32>
    %c0_87 = arith.constant 0 : index
    %c0_88 = arith.constant 0 : index
    %c0_89 = arith.constant 0 : index
    %228 = vector.load %arg20[%c0_87, %c0_88, %c0_89] : memref<2x16x1xf32, #tpu.memory_space<vmem>>, vector<1x16x1xf32>
    %229 = vector.shape_cast %228 : vector<1x16x1xf32> to vector<16x1xf32>
    %230 = vector.shape_cast %227 : vector<16x1xf32> to vector<1x16x1xf32>
    tpu.vector_store %arg20[%c0_87, %c0_88, %c0_89], %230 {strides = array<i32>} : memref<2x16x1xf32, #tpu.memory_space<vmem>>, vector<1x16x1xf32>,
    %c0_90 = arith.constant 0 : index
    %c0_91 = arith.constant 0 : index
    %231 = vector.load %arg17[%c0_90, %c0_91] : memref<16x8xbf16, #tpu.memory_space<vmem>>, vector<16x8xbf16>
    %232 = vector.extract_strided_slice %215 {offsets = [1, 0, 0], sizes = [1, 8, 1], strides = [1, 1, 1]} : vector<2x8x1xf32> to vector<1x8x1xf32>
    %233 = vector.shape_cast %232 : vector<1x8x1xf32> to vector<8x1xf32>
    %234 = arith.truncf %233 : vector<8x1xf32> to vector<8x1xbf16>
    %cst_92 = arith.constant dense<0.000000e+00> : vector<16x1xf32>
    %235 = tpu.matmul %231, %234, %cst_92 {dimension_numbers = #tpu.dot_dimension_numbers<[1], [0], [0], [1], [0, 0, 1, 1], [], []>} : vector<16x8xbf16>, vector<8x1xbf16>, vector<16x1xf32> -> vector<16x1xf32>
    %c0_93 = arith.constant 0 : index
    %c0_94 = arith.constant 0 : index
    %236 = vector.load %arg19[%c0_93, %c0_94] : memref<16x1xf32, #tpu.memory_space<vmem>>, vector<16x1xf32>
    %237 = arith.addf %235, %236 : vector<16x1xf32>
    %238 = arith.negf %237 : vector<16x1xf32>
    %239 = math.exp %238 : vector<16x1xf32>
    %cst_95 = arith.constant 1.000000e+00 : f32
    %240 = vector.broadcast %cst_95 : f32 to vector<16x1xf32>
    %241 = arith.addf %240, %239 : vector<16x1xf32>
    %242 = arith.divf %240, %241 : vector<16x1xf32>
    %c1 = arith.constant 1 : index
    %c0_96 = arith.constant 0 : index
    %c0_97 = arith.constant 0 : index
    %243 = vector.load %arg20[%c1, %c0_96, %c0_97] : memref<2x16x1xf32, #tpu.memory_space<vmem>>, vector<1x16x1xf32>
    %244 = vector.shape_cast %243 : vector<1x16x1xf32> to vector<16x1xf32>
    %245 = vector.shape_cast %242 : vector<16x1xf32> to vector<1x16x1xf32>
    tpu.vector_store %arg20[%c1, %c0_96, %c0_97], %245 {strides = array<i32>} : memref<2x16x1xf32, #tpu.memory_space<vmem>>, vector<1x16x1xf32>,
    return
  }
  func.func @transform_0(%arg0: i32) -> (i32, i32, i32) {
    %c0_i32 = arith.constant 0 : i32
    %c0_i32_0 = arith.constant 0 : i32
    %c0_i32_1 = arith.constant 0 : i32
    return %arg0, %c0_i32, %c0_i32_0 : i32, i32, i32
  }
  func.func @transform_1(%arg0: i32) -> (i32, i32, i32) {
    %c0_i32 = arith.constant 0 : i32
    %c0_i32_0 = arith.constant 0 : i32
    %c0_i32_1 = arith.constant 0 : i32
    return %arg0, %c0_i32, %c0_i32_0 : i32, i32, i32
  }
  func.func @transform_2(%arg0: i32) -> (i32, i32) {
    %c0_i32 = arith.constant 0 : i32
    %c0_i32_0 = arith.constant 0 : i32
    %c0_i32_1 = arith.constant 0 : i32
    return %c0_i32, %c0_i32_0 : i32, i32
  }
  func.func @transform_3(%arg0: i32) -> (i32, i32) {
    %c0_i32 = arith.constant 0 : i32
    %c0_i32_0 = arith.constant 0 : i32
    %c0_i32_1 = arith.constant 0 : i32
    return %c0_i32, %c0_i32_0 : i32, i32
  }
  func.func @transform_4(%arg0: i32) -> (i32, i32) {
    %c0_i32 = arith.constant 0 : i32
    %c0_i32_0 = arith.constant 0 : i32
    %c0_i32_1 = arith.constant 0 : i32
    return %c0_i32, %c0_i32_0 : i32, i32
  }
  func.func @transform_5(%arg0: i32) -> (i32, i32) {
    %c0_i32 = arith.constant 0 : i32
    %c0_i32_0 = arith.constant 0 : i32
    %c0_i32_1 = arith.constant 0 : i32
    return %c0_i32, %c0_i32_0 : i32, i32
  }
  func.func @transform_6(%arg0: i32) -> (i32, i32) {
    %c0_i32 = arith.constant 0 : i32
    %c0_i32_0 = arith.constant 0 : i32
    %c0_i32_1 = arith.constant 0 : i32
    return %c0_i32, %c0_i32_0 : i32, i32
  }
  func.func @transform_7(%arg0: i32) -> (i32, i32) {
    %c0_i32 = arith.constant 0 : i32
    %c0_i32_0 = arith.constant 0 : i32
    %c0_i32_1 = arith.constant 0 : i32
    return %c0_i32, %c0_i32_0 : i32, i32
  }
  func.func @transform_8(%arg0: i32) -> (i32, i32) {
    %c0_i32 = arith.constant 0 : i32
    %c0_i32_0 = arith.constant 0 : i32
    %c0_i32_1 = arith.constant 0 : i32
    return %c0_i32, %c0_i32_0 : i32, i32
  }
  func.func @transform_9(%arg0: i32) -> (i32, i32) {
    %c0_i32 = arith.constant 0 : i32
    %c0_i32_0 = arith.constant 0 : i32
    %c0_i32_1 = arith.constant 0 : i32
    return %c0_i32, %c0_i32_0 : i32, i32
  }
  func.func @transform_10(%arg0: i32) -> (i32, i32) {
    %c0_i32 = arith.constant 0 : i32
    %c0_i32_0 = arith.constant 0 : i32
    %c0_i32_1 = arith.constant 0 : i32
    return %c0_i32, %c0_i32_0 : i32, i32
  }
  func.func @transform_11(%arg0: i32) -> (i32, i32) {
    %c0_i32 = arith.constant 0 : i32
    %c0_i32_0 = arith.constant 0 : i32
    %c0_i32_1 = arith.constant 0 : i32
    return %c0_i32, %c0_i32_0 : i32, i32
  }
  func.func @transform_12(%arg0: i32) -> (i32, i32) {
    %c0_i32 = arith.constant 0 : i32
    %c0_i32_0 = arith.constant 0 : i32
    %c0_i32_1 = arith.constant 0 : i32
    return %c0_i32, %c0_i32_0 : i32, i32
  }
  func.func @transform_13(%arg0: i32) -> (i32, i32) {
    %c0_i32 = arith.constant 0 : i32
    %c0_i32_0 = arith.constant 0 : i32
    %c0_i32_1 = arith.constant 0 : i32
    return %c0_i32, %c0_i32_0 : i32, i32
  }
  func.func @transform_14(%arg0: i32) -> (i32, i32) {
    %c0_i32 = arith.constant 0 : i32
    %c0_i32_0 = arith.constant 0 : i32
    %c0_i32_1 = arith.constant 0 : i32
    return %c0_i32, %c0_i32_0 : i32, i32
  }
  func.func @transform_15(%arg0: i32) -> (i32, i32) {
    %c0_i32 = arith.constant 0 : i32
    %c0_i32_0 = arith.constant 0 : i32
    %c0_i32_1 = arith.constant 0 : i32
    return %c0_i32, %c0_i32_0 : i32, i32
  }
  func.func @transform_16(%arg0: i32) -> (i32, i32) {
    %c0_i32 = arith.constant 0 : i32
    %c0_i32_0 = arith.constant 0 : i32
    %c0_i32_1 = arith.constant 0 : i32
    return %c0_i32, %c0_i32_0 : i32, i32
  }
  func.func @transform_17(%arg0: i32) -> (i32, i32) {
    %c0_i32 = arith.constant 0 : i32
    %c0_i32_0 = arith.constant 0 : i32
    %c0_i32_1 = arith.constant 0 : i32
    return %c0_i32, %c0_i32_0 : i32, i32
  }
  func.func @transform_18(%arg0: i32) -> (i32, i32) {
    %c0_i32 = arith.constant 0 : i32
    %c0_i32_0 = arith.constant 0 : i32
    %c0_i32_1 = arith.constant 0 : i32
    return %c0_i32, %c0_i32_0 : i32, i32
  }
  func.func @transform_19(%arg0: i32) -> (i32, i32, i32) {
    %c0_i32 = arith.constant 0 : i32
    %c0_i32_0 = arith.constant 0 : i32
    %c0_i32_1 = arith.constant 0 : i32
    return %arg0, %c0_i32, %c0_i32_0 : i32, i32, i32
  }
}

</mosaic_0001>

<bundles_post_ra>
// kernel: tpu_custom_call.1
= control target key start
LH: loop header
LB: loop body
LE: loop exit
PB: predicated region body
PF: predicated region fallthrough
CT: control target
= control target key end

     0   :  { %vm65_vm0 = vcmask 261120   ;;  %v2141_v52 = vmov 0.0   ;;  %vm2142_vm5 = vmmov 0   ;;  %vm263_vm10 = vcmask 64512   ;;  %s2147_s26 = smov 120   ;;  %s2148_s27 = smov 56   ;;  %s2603_s0 = inlined_call_operand.vmem [shape: f32[2,8,32], index: 0, kind: input, shape index: {}]   ;;  %s2604_s2 = inlined_call_operand.vmem [shape: f32[1,32], index: 2, kind: input, shape index: {}]   ;;  %s2605_s3 = inlined_call_operand.vmem [shape: f32[1,32], index: 3, kind: input, shape index: {}]   ;;  %s2606_s6 = inlined_call_operand.vmem [shape: bf16[32,96], index: 6, kind: input, shape index: {}]   ;;  %s2607_s4 = inlined_call_operand.vmem [shape: f32[1,32], index: 4, kind: input, shape index: {}]   ;;  %s2608_s5 = inlined_call_operand.vmem [shape: f32[1,32], index: 5, kind: input, shape index: {}]   ;;  %s2609_s7 = inlined_call_operand.vmem [shape: f32[1,96], index: 7, kind: input, shape index: {}]   ;;  %s2610_s1 = inlined_call_operand.vmem [shape: f32[2,1,8], index: 1, kind: input, shape index: {}]   ;;  %s2611_s8 = inlined_call_operand.vmem [shape: bf16[32,32], index: 8, kind: input, shape index: {}]   ;;  %s2612_s9 = inlined_call_operand.vmem [shape: f32[1,32], index: 9, kind: input, shape index: {}]   ;;  %s2613_s12 = inlined_call_operand.vmem [shape: bf16[32,128], index: 12, kind: input, shape index: {}]   ;;  %s2614_s10 = inlined_call_operand.vmem [shape: f32[1,32], index: 10, kind: input, shape index: {}]   ;;  %s2615_s11 = inlined_call_operand.vmem [shape: f32[1,32], index: 11, kind: input, shape index: {}]   ;;  %s2616_s14 = inlined_call_operand.vmem [shape: bf16[128,32], index: 14, kind: input, shape index: {}]   ;;  %s2617_s13 = inlined_call_operand.vmem [shape: f32[1,128], index: 13, kind: input, shape index: {}]   ;;  %s2618_s17 = inlined_call_operand.vmem [shape: bf16[32,1], index: 17, kind: input, shape index: {}]   ;;  %s2619_s15 = inlined_call_operand.vmem [shape: f32[1,32], index: 15, kind: input, shape index: {}]   ;;  %s2620_s16 = inlined_call_operand.vmem [shape: bf16[16,8], index: 16, kind: input, shape index: {}]   ;;  %s2621_s18 = inlined_call_operand.vmem [shape: f32[16,1], index: 18, kind: input, shape index: {}]   ;;  %s2622_s19 = inlined_call_operand.vmem [shape: f32[2,16,1], index: 19, kind: output, shape index: {}]  }
   0x1   :  { %2625 = sst [smem:[#allocation2_spill]] %s2603_s0  ;;  %1853 = vmatprep.subr.bf16.mxu0 %v2141_v52  ;;  %1857 = vmatprep.mubr.msk.bf16.mxu0 %vm2142_vm5, %v2141_v52  ;;  %vm404_vm13 = vcmask 1043456   ;;  %s2150_s29 = smov 112   ;;  %vm1194_vm14 = vcmask 130048   ;;  %vm1197_vm15 = vcmask 195584  }
   0x2   :  { %2626 = sst [smem:[#allocation3_spill]] %s2604_s2  ;;  %s2629_s20 = sld [smem:[#allocation2_spill]]  ;;  %1861 = vmatprep.subr.bf16.mxu1 %v2141_v52  ;;  %1863 = vmatprep.mubr.msk.bf16.mxu1 %vm2142_vm5, %v2141_v52 }
   0x3   :  { %2627 = sst [smem:[#allocation4_spill]] %s2605_s3  ;;  %s2630_s23 = sld [smem:[#allocation3_spill]] }
   0x4   :  { %2628 = sst [smem:[#allocation5_spill]] %s2606_s6  ;;  %s2631_s6 = sld [smem:[#allocation4_spill]] }
   0x5   :  { %s2632_s28 = sld [smem:[#allocation5_spill]]  ;;  %s2151_s0 = smov 48  }
   0x6   :  { %s2152_s30 = smov 72   ;;  %s2153_s21 = smov 104  }
   0x7   :  { %s2154_s2 = smov 40   ;;  %s2155_s22 = smov 8  }
   0x8   :  { %v63_v0 = vld [vmem:[%s2629_s20] sm:$0xff]  ;;  %v64_v1 = vld [vmem:[%s2629_s20 + $0x8] sm:$0xff]  ;;  %s2156_s3 = smov 16   ;;  %s2157_s24 = smov 24  }
   0x9   :  { %v66_v2 = vsel %vm65_vm0, %v63_v0, 0.0  ;;  %v69_v3 = vsel %vm65_vm0, %v64_v1, 0.0  ;;  %v1740_v30 = vld [vmem:[%s2630_s23] ss:$0 sm:$0xff] }
   0xa   :  { %67 = vadd.xlane.f32.xlu0 %v66_v2  ;;  %v1741_v33 = vld [vmem:[%s2631_s6] ss:$0 sm:$0xff]  ;;  %s2146_s6 = smov 88  }
   0xb   :  { %v2045_v53 = vld [vmem:[%s2632_s28] sm:$0xff]   ;;  %v2046_v54 = vld [vmem:[%s2632_s28 + $0x8] sm:$0xff]   ;;  %s2149_s28 = smov 80  }
   0xc   :  { %1854 = vmatpush3.bf16.msra.mxu0 %v2045_v53 }
   0xd   :  { %1855 = vmatprep.subr.bf16.mxu0 %v2141_v52 }
   0xe   :  { %70 = vadd.xlane.f32.xlu0 %v69_v3 }
  0x10   :  { %1856 = vmatpush3.bf16.msra.mxu0 %v2046_v54 }
  0x11   :  { %1867 = vmatprep.subr.bf16.mxu0 %v2141_v52 }
  0x97   :  { %v68_v4 = vpop.xlane.xlu0 %67 }
  0x98   :  { %v73_v5 = vmul.f32 0.03125, %v68_v4 }
  0x9a   :  { %v75_v6 = vsub.f32 %v63_v0, %v73_v5 }
  0x9b   :  { %v71_v7 = vpop.xlane.xlu0 %70 }
  0x9c   :  { %v74_v8 = vmul.f32 0.03125, %v71_v7  ;;  %v77_v9 = vmul.f32 %v75_v6, %v75_v6  ;;  %v95_v31 = vmul.f32 %v1740_v30, %v75_v6  ;;  %v1742_v7 = vld [vmem:[%s2607_s4] ss:$0 sm:$0xff] }
  0x9e   :  { %v76_v10 = vsub.f32 %v64_v1, %v74_v8  ;;  %v79_v11 = vsel %vm65_vm0, %v77_v9, 0.0 }
  0x9f   :  { %80 = vadd.xlane.f32.xlu1 %v79_v11 }
  0xa0   :  { %v78_v12 = vmul.f32 %v76_v10, %v76_v10  ;;  %v96_v35 = vmul.f32 %v1740_v30, %v76_v10 }
  0xa2   :  { %v82_v13 = vsel %vm65_vm0, %v78_v12, 0.0 }
  0xa3   :  { %83 = vadd.xlane.f32.xlu1 %v82_v13  ;;  %v1743_v13 = vld [vmem:[%s2608_s5] ss:$0 sm:$0xff]  ;;  %s2143_s5 = smov 96  }
 0x12c   :  { %v81_v14 = vpop.xlane.xlu1 %80 }
 0x12d   :  { %v86_v15 = vmul.f32 0.032258064, %v81_v14 }
 0x12f   :  { %2063 = vrsqrt.f32 %v86_v15  ;;  %vm99_vm1 = vcmp.eq.f32.partialorder %v86_v15, inf  ;;  %v102_v20 = vand.u32 2147483648, %v86_v15  ;;  %vm101_vm2 = vcmp.eq.f32.partialorder %v86_v15, 0.0 }
 0x130   :  { %v84_v16 = vpop.xlane.xlu1 %83 }
 0x131   :  { %v87_v17 = vmul.f32 0.032258064, %v84_v16 }
 0x133   :  { %2065 = vrsqrt.f32 %v87_v17  ;;  %vm106_vm3 = vcmp.eq.f32.partialorder %v87_v17, inf  ;;  %v109_v26 = vand.u32 2147483648, %v87_v17  ;;  %vm108_vm4 = vcmp.eq.f32.partialorder %v87_v17, 0.0 }
 0x139   :  { %v2064_v18 = vpop.eup %2063 }
 0x13a   :  { %v98_v19 = vmul.f32 %v2064_v18, %v86_v15  ;;  %v1744_v18 = vld [vmem:[%s2609_s7] ss:$0 sm:$0xff] }
 0x13c   :  { %v100_v21 = vsel %vm99_vm1, %v86_v15, %v98_v19 }
 0x13d   :  { %v2066_v22 = vpop.eup %2065  ;;  %v103_v23 = vsel %vm101_vm2, %v102_v20, %v100_v21 }
 0x13e   :  { %v105_v24 = vmul.f32 %v2066_v22, %v87_v17  ;;  %v111_v25 = vadd.f32 1e-06, %v103_v23 }
 0x140   :  { %v107_v27 = vsel %vm106_vm3, %v87_v17, %v105_v24  ;;  %2067 = vrcp.f32 %v111_v25 }
 0x141   :  { %v110_v28 = vsel %vm108_vm4, %v109_v26, %v107_v27 }
 0x142   :  { %v112_v29 = vadd.f32 1e-06, %v110_v28 }
 0x144   :  { %2069 = vrcp.f32 %v112_v29 }
 0x14a   :  { %v2068_v32 = vpop.eup %2067 }
 0x14b   :  { %v114_v34 = vmul.f32 %v2068_v32, %v95_v31  ;;  %v363_v31 = vlaneseq  ;;  %v252_v32 = vld [vmem:[%s2610_s1] sm:$0x1] }
 0x14c   :  { %vm254_vm11 = vcmp.gt.f32.partialorder %v252_v32, 0.0 }
 0x14d   :  { %v2274_v36 = vadd.f32 %v1741_v33, %v114_v34  ;;  %v253_v34 = vld [vmem:[%s2610_s1 + $0x1] sm:$0x1]  ;;  %s2145_s1 = smov 64  }
 0x14e   :  { %v2070_v37 = vpop.eup %2069  ;;  %vm255_vm12 = vcmp.gt.f32.partialorder %v253_v34, 0.0 }
 0x14f   :  { %v126_v38 = vsel %vm65_vm0, %v2274_v36, 0.0  ;;  %v116_v39 = vmul.f32 %v2070_v37, %v96_v35  ;;  %v2144_v37 = vmov -1e+09  }
 0x150   :  { %127 = vadd.xlane.f32.xlu0 %v126_v38  ;;  %v256_v38 = vsel %vm254_vm11, 0.0, %v2144_v37 }
 0x151   :  { %v2278_v40 = vadd.f32 %v1741_v33, %v116_v39  ;;  %v364_v33 = vshrl.u32 %v363_v31, 7  ;;  %v257_v39 = vsel %vm255_vm12, 0.0, %v2144_v37 }
 0x153   :  { %v129_v41 = vsel %vm65_vm0, %v2278_v40, 0.0  ;;  %v365_v35 = vsub.s32 0, %v364_v33 }
 0x154   :  { %130 = vadd.xlane.f32.xlu1 %v129_v41 }
 0x155   :  { %v2336_v41 = vrot.slane %v256_v38, %v365_v35 }
 0x1dd   :  { %v128_v42 = vpop.xlane.xlu0 %127 }
 0x1de   :  { %v132_v43 = vmul.f32 0.03125, %v128_v42 }
 0x1e0   :  { %v134_v44 = vsub.f32 %v2274_v36, %v132_v43 }
 0x1e1   :  { %v131_v45 = vpop.xlane.xlu1 %130 }
 0x1e2   :  { %v133_v46 = vmul.f32 0.03125, %v131_v45  ;;  %v136_v47 = vmul.f32 %v134_v44, %v134_v44  ;;  %v153_v9 = vmul.f32 %v1742_v7, %v134_v44  ;;  %v2338_v45 = vrot.slane %v257_v39, %v365_v35 }
 0x1e4   :  { %v135_v48 = vsub.f32 %v2278_v40, %v133_v46  ;;  %v138_v49 = vsel %vm65_vm0, %v136_v47, 0.0 }
 0x1e5   :  { %139 = vadd.xlane.f32.xlu0 %v138_v49 }
 0x1e6   :  { %v137_v50 = vmul.f32 %v135_v48, %v135_v48  ;;  %v154_v10 = vmul.f32 %v1742_v7, %v135_v48 }
 0x1e8   :  { %v141_v51 = vsel %vm65_vm0, %v137_v50, 0.0 }
 0x1e9   :  { %142 = vadd.xlane.f32.xlu1 %v141_v51 }
 0x272   :  { %v140_v55 = vpop.xlane.xlu0 %139 }
 0x273   :  { %v144_v56 = vmul.f32 0.032258064, %v140_v55 }
 0x275   :  { %2071 = vrsqrt.f32 %v144_v56  ;;  %vm157_vm6 = vcmp.eq.f32.partialorder %v144_v56, inf  ;;  %v160_v61 = vand.u32 2147483648, %v144_v56  ;;  %vm159_vm7 = vcmp.eq.f32.partialorder %v144_v56, 0.0 }
 0x276   :  { %v143_v57 = vpop.xlane.xlu1 %142 }
 0x277   :  { %v145_v58 = vmul.f32 0.032258064, %v143_v57 }
 0x279   :  { %2073 = vrsqrt.f32 %v145_v58  ;;  %vm164_vm8 = vcmp.eq.f32.partialorder %v145_v58, inf  ;;  %v167_v3 = vand.u32 2147483648, %v145_v58  ;;  %vm166_vm9 = vcmp.eq.f32.partialorder %v145_v58, 0.0 }
 0x27f   :  { %v2072_v59 = vpop.eup %2071 }
 0x280   :  { %v156_v60 = vmul.f32 %v2072_v59, %v144_v56 }
 0x282   :  { %v158_v62 = vsel %vm157_vm6, %v144_v56, %v156_v60 }
 0x283   :  { %v2074_v63 = vpop.eup %2073  ;;  %v161_v0 = vsel %vm159_vm7, %v160_v61, %v158_v62 }
 0x284   :  { %v169_v1 = vadd.f32 1e-06, %v161_v0  ;;  %v163_v2 = vmul.f32 %v2074_v63, %v145_v58 }
 0x286   :  { %2075 = vrcp.f32 %v169_v1  ;;  %v165_v4 = vsel %vm164_vm8, %v145_v58, %v163_v2 }
 0x287   :  { %v168_v5 = vsel %vm166_vm9, %v167_v3, %v165_v4 }
 0x288   :  { %v170_v6 = vadd.f32 1e-06, %v168_v5 }
 0x28a   :  { %2077 = vrcp.f32 %v170_v6 }
 0x290   :  { %v2076_v8 = vpop.eup %2075 }
 0x291   :  { %v172_v11 = vmul.f32 %v2076_v8, %v153_v9 }
 0x293   :  { %v182_v15 = vadd.f32 %v1743_v13, %v172_v11 }
 0x294   :  { %v2078_v12 = vpop.eup %2077 }
 0x295   :  { %v174_v14 = vmul.f32 %v2078_v12, %v154_v10 }
 0x297   :  { %v183_v16 = vadd.f32 %v1743_v13, %v174_v14 }
 0x299   :  { %v188_v17 = vpack.c.bf16 %v183_v16, %v182_v15 }
 0x29b   :  { %1858 = vmatmul.mubr.msk.bf16.vlgmr.msra.gmra.mrb[0].mxu0 %vm65_vm0, %v188_v17 }
 0x29c   :  { %1869 = vmatprep.mubr.msk.bf16.mxu0 %vm2142_vm5, %v2141_v52 }
 0x36e   :  { %v245_v19 = vpop.f32.mrb[0].mxu0 }
 0x36f   :  { %v246_v20 = vadd.f32 %v1744_v18, %v245_v19  ;;  %v1859_v21 = vpop.f32.mrb[1].mxu0 }
 0x370   :  { %v248_v22 = vpop.f32.mrb[2].mxu0 }
 0x371   :  { %v2312_v23 = vpack.c.bf16 %v246_v20, %v246_v20  ;;  %v249_v24 = vadd.f32 %v1744_v18, %v248_v22  ;;  %v1860_v25 = vpop.f32.mrb[3].mxu0 }
 0x373   :  { %v2314_v26 = vpack.c.bf16 %v249_v24, %v249_v24  ;;  %261 = vrot.lane.b32.xlu0 %v2312_v23, %s2143_s5 }
 0x375   :  { %311 = vrot.lane.b32.xlu1 %v2314_v26, %s2143_s5 }
 0x3e5   :  { %v262_v27 = vpop.permute.xlu0 %261 }
 0x3e6   :  { %v268_v28 = vsel %vm263_vm10, %v262_v27, 0 }
 0x3e7   :  { %1862 = vmatpush3.bf16.xpose.msra.mxu1 %v268_v28  ;;  %v312_v29 = vpop.permute.xlu1 %311 }
 0x3e8   :  { %v317_v30 = vsel %vm263_vm10, %v312_v29, 0  ;;  %1873 = vmatprep.subr.bf16.mxu1 %v2141_v52 }
 0x3e9   :  { %1868 = vmatpush3.bf16.xpose.msra.mxu0 %v317_v30 }
 0x3ea   :  { %1879 = vmatprep.subr.bf16.mxu0 %v2141_v52 }
 0x3ee   :  { %1864 = vmatmul.mubr.msk.bf16.vlgmr.msra.gmra.mrb[0].mxu1 %vm263_vm10, %v2312_v23 }
 0x3ef   :  { %1875 = vmatprep.mubr.msk.bf16.mxu1 %vm2142_vm5, %v2141_v52 }
 0x3f0   :  { %1870 = vmatmul.mubr.msk.bf16.vlgmr.msra.gmra.mrb[4].mxu0 %vm263_vm10, %v2314_v26 }
 0x3f1   :  { %1881 = vmatprep.mubr.msk.bf16.mxu0 %vm2142_vm5, %v2141_v52 }
 0x4c1   :  { %v304_v42 = vpop.f32.mrb[0].mxu1 }
 0x4c2   :  { %v359_v43 = vmul.f32 0.35355338, %v304_v42  ;;  %v1865_v44 = vpop.f32.mrb[1].mxu1 }
 0x4c3   :  { %v307_v46 = vpop.f32.mrb[2].mxu1  ;;  %v353_v47 = vpop.f32.mrb[4].mxu0 }
 0x4c4   :  { %v360_v48 = vmul.f32 0.35355338, %v353_v47  ;;  %v1866_v49 = vpop.f32.mrb[3].mxu1  ;;  %v1871_v50 = vpop.f32.mrb[5].mxu0  ;;  %v373_v51 = vadd.f32 %v2336_v41, %v359_v43 }
 0x4c5   :  { %v356_v53 = vpop.f32.mrb[6].mxu0 }
 0x4c6   :  { %v1872_v54 = vpop.f32.mrb[7].mxu0  ;;  %v375_v55 = vsel %vm263_vm10, %v373_v51, -inf  ;;  %v374_v56 = vadd.f32 %v2338_v45, %v360_v48 }
 0x4c7   :  { %376 = vmax.xlane.f32.xlu1 %v375_v55 }
 0x4c8   :  { %v378_v57 = vsel %vm263_vm10, %v374_v56, -inf }
 0x4c9   :  { %379 = vmax.xlane.f32.xlu0 %v378_v57 }
 0x4d8   :  { %448 = vrot.lane.b32.xlu1 %v2314_v26, %s2145_s1 }
 0x4dc   :  { %498 = vrot.lane.b32.xlu1 %v2312_v23, %s2146_s6 }
 0x554   :  { %v377_v58 = vpop.xlane.xlu1 %376 }
 0x555   :  { %v381_v59 = vsub.f32 %v373_v51, %v377_v58 }
 0x556   :  { %v380_v60 = vpop.xlane.xlu0 %379 }
 0x557   :  { %v383_v61 = vmul.f32 1.442695, %v381_v59  ;;  %v382_v62 = vsub.f32 %v374_v56, %v380_v60 }
 0x558   :  { %v449_v63 = vpop.permute.xlu1 %448 }
 0x559   :  { %2079 = vpow2.f32 %v383_v61  ;;  %v385_v0 = vmul.f32 1.442695, %v382_v62  ;;  %v454_v1 = vsel %vm404_vm13, %v449_v63, 0 }
 0x55a   :  { %1880 = vmatpush3.bf16.msra.mxu0 %v454_v1 }
 0x55b   :  { %2081 = vpow2.f32 %v385_v0  ;;  %1891 = vmatprep.subr.bf16.mxu0 %v2141_v52 }
 0x55c   :  { %v499_v6 = vpop.permute.xlu1 %498 }
 0x55d   :  { %v504_v17 = vsel %vm263_vm10, %v499_v6, 0 }
 0x563   :  { %v2080_v2 = vpop.eup %2079 }
 0x564   :  { %v387_v3 = vsel %vm263_vm10, %v2080_v2, 0.0 }
 0x565   :  { %v2082_v4 = vpop.eup %2081  ;;  %388 = vadd.xlane.f32.xlu0 %v387_v3 }
 0x566   :  { %v390_v5 = vsel %vm263_vm10, %v2082_v4, 0.0 }
 0x567   :  { %391 = vadd.xlane.f32.xlu1 %v390_v5 }
 0x578   :  { %548 = vrot.lane.b32.xlu1 %v2314_v26, %s2146_s6 }
 0x57b   :  { %399 = vrot.lane.b32.xlu0 %v2312_v23, %s2145_s1 }
 0x57c   :  { %546 = vrot.lane.b32.xlu1 %v2314_v26, %s2147_s26 }
 0x57f   :  { %496 = vrot.lane.b32.xlu0 %v2312_v23, %s2147_s26 }
 0x5f2   :  { %v389_v7 = vpop.xlane.xlu0 %388 }
 0x5f3   :  { %2083 = vrcp.f32 %v389_v7 }
 0x5f4   :  { %v392_v8 = vpop.xlane.xlu1 %391 }
 0x5f5   :  { %2085 = vrcp.f32 %v392_v8 }
 0x5f6   :  { %v400_v9 = vpop.permute.xlu0 %399 }
 0x5f7   :  { %v406_v10 = vsel %vm404_vm13, %v400_v9, 0 }
 0x5f8   :  { %1874 = vmatpush3.bf16.msra.mxu1 %v406_v10  ;;  %v549_v16 = vpop.permute.xlu1 %548 }
 0x5f9   :  { %1885 = vmatprep.subr.bf16.mxu1 %v2141_v52  ;;  %v554_v19 = vsel %vm263_vm10, %v549_v16, 0 }
 0x5fa   :  { %v497_v20 = vpop.permute.xlu0 %496 }
 0x5fc   :  { %v547_v21 = vpop.permute.xlu1 %546 }
 0x5fd   :  { %v2084_v11 = vpop.eup %2083 }
 0x5fe   :  { %v395_v12 = vmul.f32 %v2084_v11, %v2080_v2 }
 0x5ff   :  { %v2086_v13 = vpop.eup %2085 }
 0x600   :  { %v396_v14 = vmul.f32 %v2086_v13, %v2082_v4  ;;  %v397_v15 = vpack.c.bf16 %v395_v12, %v395_v12 }
 0x602   :  { %1876 = vmatmul.mubr.msk.bf16.vlgmr.msra.gmra.mrb[4].mxu1 %vm263_vm10, %v397_v15  ;;  %v398_v18 = vpack.c.bf16 %v396_v14, %v396_v14 }
 0x603   :  { %1886 = vmatpush3.bf16.xpose.msra.mxu1 %v504_v17  ;;  %1887 = vmatprep.mubr.msk.bf16.mxu1 %vm2142_vm5, %v2141_v52 }
 0x604   :  { %1882 = vmatmul.mubr.msk.bf16.vlgmr.msra.gmra.mrb[8].mxu0 %vm263_vm10, %v398_v18  ;;  %1897 = vmatprep.subr.bf16.mxu1 %v2141_v52 }
 0x605   :  { %1892 = vmatpush3.bf16.xpose.msra.mxu0 %v554_v19  ;;  %1893 = vmatprep.mubr.msk.bf16.mxu0 %vm2142_vm5, %v2141_v52 }
 0x606   :  { %1903 = vmatprep.subr.bf16.mxu0 %v2141_v52 }
 0x60a   :  { %1888 = vmatmul.mubr.msk.bf16.vlgmr.msra.gmra.mrb[8].mxu1 %vm263_vm10, %v497_v20 }
 0x60b   :  { %1899 = vmatprep.mubr.msk.bf16.mxu1 %vm2142_vm5, %v2141_v52 }
 0x60c   :  { %1894 = vmatmul.mubr.msk.bf16.vlgmr.msra.gmra.mrb[12].mxu0 %vm263_vm10, %v547_v21 }
 0x60d   :  { %1905 = vmatprep.mubr.msk.bf16.mxu0 %vm2142_vm5, %v2141_v52 }
 0x6d5   :  { %v2372_v22 = vpop.f32.mrb[4].mxu1 }
 0x6d6   :  { %v1877_v24 = vpop.f32.mrb[5].mxu1 }
 0x6d7   :  { %v445_v25 = vpop.f32.mrb[6].mxu1  ;;  %v2374_v27 = vpop.f32.mrb[8].mxu0 }
 0x6d8   :  { %v1878_v28 = vpop.f32.mrb[7].mxu1  ;;  %v1883_v29 = vpop.f32.mrb[9].mxu0 }
 0x6d9   :  { %v493_v30 = vpop.f32.mrb[10].mxu0 }
 0x6da   :  { %v1884_v31 = vpop.f32.mrb[11].mxu0 }
 0x6dd   :  { %v540_v32 = vpop.f32.mrb[8].mxu1 }
 0x6de   :  { %v596_v33 = vmul.f32 0.35355338, %v540_v32  ;;  %v1889_v34 = vpop.f32.mrb[9].mxu1 }
 0x6df   :  { %v543_v35 = vpop.f32.mrb[10].mxu1  ;;  %v590_v37 = vpop.f32.mrb[12].mxu0 }
 0x6e0   :  { %v597_v38 = vmul.f32 0.35355338, %v590_v37  ;;  %v1890_v39 = vpop.f32.mrb[11].mxu1  ;;  %v1895_v42 = vpop.f32.mrb[13].mxu0  ;;  %v598_v43 = vadd.f32 %v596_v33, %v2336_v41 }
 0x6e1   :  { %v593_v44 = vpop.f32.mrb[14].mxu0 }
 0x6e2   :  { %v1896_v46 = vpop.f32.mrb[15].mxu0  ;;  %v600_v47 = vsel %vm263_vm10, %v598_v43, -inf  ;;  %v599_v48 = vadd.f32 %v597_v38, %v2338_v45 }
 0x6e3   :  { %601 = vmax.xlane.f32.xlu0 %v600_v47 }
 0x6e4   :  { %v603_v49 = vsel %vm263_vm10, %v599_v48, -inf }
 0x6e5   :  { %604 = vmax.xlane.f32.xlu1 %v603_v49 }
 0x6f6   :  { %672 = vrot.lane.b32.xlu1 %v2314_v26, %s2148_s27 }
 0x6fa   :  { %722 = vrot.lane.b32.xlu1 %v2312_v23, %s2149_s28 }
 0x6fe   :  { %772 = vrot.lane.b32.xlu1 %v2314_v26, %s2149_s28 }
 0x702   :  { %770 = vrot.lane.b32.xlu1 %v2314_v26, %s2150_s29 }
 0x770   :  { %v602_v50 = vpop.xlane.xlu0 %601 }
 0x771   :  { %v606_v51 = vsub.f32 %v598_v43, %v602_v50 }
 0x772   :  { %v605_v53 = vpop.xlane.xlu1 %604 }
 0x773   :  { %v608_v54 = vmul.f32 1.442695, %v606_v51  ;;  %v607_v55 = vsub.f32 %v599_v48, %v605_v53 }
 0x775   :  { %2087 = vpow2.f32 %v608_v54  ;;  %v610_v56 = vmul.f32 1.442695, %v607_v55 }
 0x776   :  { %v673_v57 = vpop.permute.xlu1 %672 }
 0x777   :  { %2089 = vpow2.f32 %v610_v56  ;;  %v678_v58 = vsel %vm404_vm13, %v673_v57, 0 }
 0x778   :  { %1904 = vmatpush3.bf16.msra.mxu0 %v678_v58 }
 0x779   :  { %1915 = vmatprep.subr.bf16.mxu0 %v2141_v52 }
 0x77a   :  { %v723_v4 = vpop.permute.xlu1 %722 }
 0x77b   :  { %v728_v10 = vsel %vm263_vm10, %v723_v4, 0 }
 0x77e   :  { %v773_v9 = vpop.permute.xlu1 %772 }
 0x77f   :  { %v2088_v59 = vpop.eup %2087  ;;  %v778_v12 = vsel %vm263_vm10, %v773_v9, 0 }
 0x780   :  { %v612_v60 = vsel %vm263_vm10, %v2088_v59, 0.0 }
 0x781   :  { %v2090_v61 = vpop.eup %2089  ;;  %613 = vadd.xlane.f32.xlu0 %v612_v60 }
 0x782   :  { %v615_v62 = vsel %vm263_vm10, %v2090_v61, 0.0  ;;  %v771_v14 = vpop.permute.xlu1 %770 }
 0x785   :  { %616 = vadd.xlane.f32.xlu0 %v615_v62 }
 0x79b   :  { %624 = vrot.lane.b32.xlu0 %v2312_v23, %s2148_s27 }
 0x79f   :  { %720 = vrot.lane.b32.xlu0 %v2312_v23, %s2150_s29 }
 0x80e   :  { %v614_v63 = vpop.xlane.xlu0 %613 }
 0x80f   :  { %2091 = vrcp.f32 %v614_v63 }
 0x812   :  { %v617_v0 = vpop.xlane.xlu0 %616 }
 0x813   :  { %2093 = vrcp.f32 %v617_v0 }
 0x816   :  { %v625_v1 = vpop.permute.xlu0 %624 }
 0x817   :  { %v630_v2 = vsel %vm404_vm13, %v625_v1, 0 }
 0x818   :  { %1898 = vmatpush3.bf16.msra.mxu1 %v630_v2 }
 0x819   :  { %v2092_v3 = vpop.eup %2091  ;;  %1909 = vmatprep.subr.bf16.mxu1 %v2141_v52 }
 0x81a   :  { %v620_v5 = vmul.f32 %v2092_v3, %v2088_v59  ;;  %v721_v13 = vpop.permute.xlu0 %720 }
 0x81c   :  { %v622_v6 = vpack.c.bf16 %v620_v5, %v620_v5 }
 0x81d   :  { %v2094_v7 = vpop.eup %2093 }
 0x81e   :  { %v621_v8 = vmul.f32 %v2094_v7, %v2090_v61  ;;  %1900 = vmatmul.mubr.msk.bf16.vlgmr.msra.gmra.mrb[12].mxu1 %vm263_vm10, %v622_v6 }
 0x81f   :  { %1911 = vmatprep.mubr.msk.bf16.mxu1 %vm2142_vm5, %v2141_v52 }
 0x820   :  { %v623_v11 = vpack.c.bf16 %v621_v8, %v621_v8 }
 0x821   :  { %1910 = vmatpush3.bf16.xpose.msra.mxu1 %v728_v10 }
 0x822   :  { %1906 = vmatmul.mubr.msk.bf16.vlgmr.msra.gmra.mrb[16].mxu0 %vm263_vm10, %v623_v11  ;;  %1921 = vmatprep.subr.bf16.mxu1 %v2141_v52 }
 0x823   :  { %1916 = vmatpush3.bf16.xpose.msra.mxu0 %v778_v12  ;;  %1917 = vmatprep.mubr.msk.bf16.mxu0 %vm2142_vm5, %v2141_v52 }
 0x824   :  { %1927 = vmatprep.subr.bf16.mxu0 %v2141_v52 }
 0x828   :  { %1912 = vmatmul.mubr.msk.bf16.vlgmr.msra.gmra.mrb[16].mxu1 %vm263_vm10, %v721_v13 }
 0x829   :  { %1923 = vmatprep.mubr.msk.bf16.mxu1 %vm2142_vm5, %v2141_v52 }
 0x82a   :  { %1918 = vmatmul.mubr.msk.bf16.vlgmr.msra.gmra.mrb[20].mxu0 %vm263_vm10, %v771_v14 }
 0x82b   :  { %1929 = vmatprep.mubr.msk.bf16.mxu0 %vm2142_vm5, %v2141_v52 }
 0x8f1   :  { %v2408_v15 = vpop.f32.mrb[12].mxu1 }
 0x8f2   :  { %v1901_v16 = vpop.f32.mrb[13].mxu1 }
 0x8f3   :  { %v669_v17 = vpop.f32.mrb[14].mxu1 }
 0x8f4   :  { %v1902_v18 = vpop.f32.mrb[15].mxu1 }
 0x8f5   :  { %v2410_v19 = vpop.f32.mrb[16].mxu0 }
 0x8f6   :  { %v2030_v20 = vpack.i.bf16 %v2410_v19, %v2408_v15  ;;  %v1907_v21 = vpop.f32.mrb[17].mxu0 }
 0x8f7   :  { %v717_v24 = vpop.f32.mrb[18].mxu0 }
 0x8f8   :  { %v1908_v25 = vpop.f32.mrb[19].mxu0 }
 0x8fb   :  { %v764_v28 = vpop.f32.mrb[16].mxu1 }
 0x8fc   :  { %v820_v29 = vmul.f32 0.35355338, %v764_v28  ;;  %v1913_v30 = vpop.f32.mrb[17].mxu1 }
 0x8fd   :  { %v767_v31 = vpop.f32.mrb[18].mxu1  ;;  %v814_v32 = vpop.f32.mrb[20].mxu0 }
 0x8fe   :  { %v821_v33 = vmul.f32 0.35355338, %v814_v32  ;;  %v1914_v34 = vpop.f32.mrb[19].mxu1  ;;  %v1919_v35 = vpop.f32.mrb[21].mxu0  ;;  %v822_v37 = vadd.f32 %v820_v29, %v2336_v41 }
 0x8ff   :  { %v817_v38 = vpop.f32.mrb[22].mxu0 }
 0x900   :  { %v1920_v39 = vpop.f32.mrb[23].mxu0  ;;  %v824_v42 = vsel %vm263_vm10, %v822_v37, -inf  ;;  %v823_v43 = vadd.f32 %v821_v33, %v2338_v45 }
 0x901   :  { %825 = vmax.xlane.f32.xlu0 %v824_v42 }
 0x902   :  { %v827_v44 = vsel %vm263_vm10, %v823_v43, -inf }
 0x903   :  { %828 = vmax.xlane.f32.xlu1 %v827_v44 }
 0x914   :  { %896 = vrot.lane.b32.xlu1 %v2314_v26, %s2151_s0 }
 0x918   :  { %946 = vrot.lane.b32.xlu1 %v2312_v23, %s2152_s30 }
 0x91c   :  { %996 = vrot.lane.b32.xlu1 %v2314_v26, %s2152_s30 }
 0x920   :  { %994 = vrot.lane.b32.xlu1 %v2314_v26, %s2153_s21 }
 0x98e   :  { %v826_v46 = vpop.xlane.xlu0 %825 }
 0x98f   :  { %v830_v47 = vsub.f32 %v822_v37, %v826_v46 }
 0x990   :  { %v829_v48 = vpop.xlane.xlu1 %828 }
 0x991   :  { %v832_v49 = vmul.f32 1.442695, %v830_v47  ;;  %v831_v50 = vsub.f32 %v823_v43, %v829_v48 }
 0x993   :  { %2095 = vpow2.f32 %v832_v49  ;;  %v834_v51 = vmul.f32 1.442695, %v831_v50 }
 0x994   :  { %v897_v53 = vpop.permute.xlu1 %896 }
 0x995   :  { %2097 = vpow2.f32 %v834_v51  ;;  %v902_v54 = vsel %vm404_vm13, %v897_v53, 0 }
 0x996   :  { %1928 = vmatpush3.bf16.msra.mxu0 %v902_v54 }
 0x997   :  { %1939 = vmatprep.subr.bf16.mxu0 %v2141_v52 }
 0x998   :  { %v947_v0 = vpop.permute.xlu1 %946 }
 0x999   :  { %v952_v6 = vsel %vm263_vm10, %v947_v0, 0 }
 0x99c   :  { %v997_v5 = vpop.permute.xlu1 %996 }
 0x99d   :  { %v2096_v55 = vpop.eup %2095  ;;  %v1002_v8 = vsel %vm263_vm10, %v997_v5, 0 }
 0x99e   :  { %v836_v56 = vsel %vm263_vm10, %v2096_v55, 0.0 }
 0x99f   :  { %v2098_v57 = vpop.eup %2097  ;;  %837 = vadd.xlane.f32.xlu0 %v836_v56 }
 0x9a0   :  { %v839_v58 = vsel %vm263_vm10, %v2098_v57, 0.0  ;;  %v995_v10 = vpop.permute.xlu1 %994 }
 0x9a3   :  { %840 = vadd.xlane.f32.xlu0 %v839_v58 }
 0x9b9   :  { %848 = vrot.lane.b32.xlu0 %v2312_v23, %s2151_s0 }
 0x9bd   :  { %944 = vrot.lane.b32.xlu0 %v2312_v23, %s2153_s21 }
 0xa2c   :  { %v838_v59 = vpop.xlane.xlu0 %837 }
 0xa2d   :  { %2099 = vrcp.f32 %v838_v59 }
 0xa30   :  { %v841_v60 = vpop.xlane.xlu0 %840 }
 0xa31   :  { %2101 = vrcp.f32 %v841_v60 }
 0xa34   :  { %v849_v61 = vpop.permute.xlu0 %848 }
 0xa35   :  { %v854_v62 = vsel %vm404_vm13, %v849_v61, 0  ;;  %v2047_v61 = vld [vmem:[%s2611_s8] sm:$0xff]  }
 0xa36   :  { %1922 = vmatpush3.bf16.msra.mxu1 %v854_v62  ;;  %v2048_v62 = vld [vmem:[%s2611_s8 + $0x8] sm:$0xff]  }
 0xa37   :  { %v2100_v63 = vpop.eup %2099  ;;  %1933 = vmatprep.subr.bf16.mxu1 %v2141_v52 }
 0xa38   :  { %v844_v1 = vmul.f32 %v2100_v63, %v2096_v55  ;;  %v945_v9 = vpop.permute.xlu0 %944 }
 0xa3a   :  { %v846_v2 = vpack.c.bf16 %v844_v1, %v844_v1 }
 0xa3b   :  { %v2102_v3 = vpop.eup %2101 }
 0xa3c   :  { %v845_v4 = vmul.f32 %v2102_v3, %v2098_v57  ;;  %1924 = vmatmul.mubr.msk.bf16.vlgmr.msra.gmra.mrb[20].mxu1 %vm263_vm10, %v846_v2 }
 0xa3d   :  { %1935 = vmatprep.mubr.msk.bf16.mxu1 %vm2142_vm5, %v2141_v52 }
 0xa3e   :  { %v847_v7 = vpack.c.bf16 %v845_v4, %v845_v4 }
 0xa3f   :  { %1934 = vmatpush3.bf16.xpose.msra.mxu1 %v952_v6 }
 0xa40   :  { %1930 = vmatmul.mubr.msk.bf16.vlgmr.msra.gmra.mrb[24].mxu0 %vm263_vm10, %v847_v7  ;;  %1945 = vmatprep.subr.bf16.mxu1 %v2141_v52 }
 0xa41   :  { %1940 = vmatpush3.bf16.xpose.msra.mxu0 %v1002_v8  ;;  %1941 = vmatprep.mubr.msk.bf16.mxu0 %vm2142_vm5, %v2141_v52 }
 0xa42   :  { %1951 = vmatprep.subr.bf16.mxu0 %v2141_v52 }
 0xa46   :  { %1936 = vmatmul.mubr.msk.bf16.vlgmr.msra.gmra.mrb[24].mxu1 %vm263_vm10, %v945_v9 }
 0xa47   :  { %1947 = vmatprep.mubr.msk.bf16.mxu1 %vm2142_vm5, %v2141_v52 }
 0xa48   :  { %1942 = vmatmul.mubr.msk.bf16.vlgmr.msra.gmra.mrb[28].mxu0 %vm263_vm10, %v995_v10 }
 0xa49   :  { %1953 = vmatprep.mubr.msk.bf16.mxu0 %vm2142_vm5, %v2141_v52 }
 0xb0f   :  { %v890_v11 = vpop.f32.mrb[20].mxu1 }
 0xb10   :  { %v1925_v12 = vpop.f32.mrb[21].mxu1 }
 0xb11   :  { %v893_v13 = vpop.f32.mrb[22].mxu1 }
 0xb12   :  { %v1926_v14 = vpop.f32.mrb[23].mxu1 }
 0xb13   :  { %v938_v16 = vpop.f32.mrb[24].mxu0 }
 0xb14   :  { %v2035_v17 = vpack.i.bf16 %v938_v16, %v890_v11  ;;  %v1931_v18 = vpop.f32.mrb[25].mxu0 }
 0xb15   :  { %v941_v21 = vpop.f32.mrb[26].mxu0 }
 0xb16   :  { %v1932_v24 = vpop.f32.mrb[27].mxu0 }
 0xb19   :  { %v988_v25 = vpop.f32.mrb[24].mxu1 }
 0xb1a   :  { %v1044_v28 = vmul.f32 0.35355338, %v988_v25  ;;  %v1937_v29 = vpop.f32.mrb[25].mxu1 }
 0xb1b   :  { %v991_v30 = vpop.f32.mrb[26].mxu1  ;;  %v1038_v31 = vpop.f32.mrb[28].mxu0 }
 0xb1c   :  { %v1045_v32 = vmul.f32 0.35355338, %v1038_v31  ;;  %v1938_v33 = vpop.f32.mrb[27].mxu1  ;;  %v1943_v34 = vpop.f32.mrb[29].mxu0  ;;  %v1046_v35 = vadd.f32 %v1044_v28, %v2336_v41  ;;  %v1764_v31 = vld [vmem:[%s2612_s9] ss:$0 sm:$0xff] }
 0xb1d   :  { %v1041_v37 = vpop.f32.mrb[30].mxu0 }
 0xb1e   :  { %v1944_v38 = vpop.f32.mrb[31].mxu0  ;;  %v1048_v39 = vsel %vm263_vm10, %v1046_v35, -inf  ;;  %v1047_v42 = vadd.f32 %v1045_v32, %v2338_v45 }
 0xb1f   :  { %1049 = vmax.xlane.f32.xlu0 %v1048_v39 }
 0xb20   :  { %v1051_v43 = vsel %vm263_vm10, %v1047_v42, -inf }
 0xb21   :  { %1052 = vmax.xlane.f32.xlu1 %v1051_v43 }
 0xb32   :  { %1120 = vrot.lane.b32.xlu1 %v2314_v26, %s2154_s2 }
 0xb36   :  { %2031 = vrot.lane.b32.xlu1 %v2030_v20, %s2155_s22 }
 0xb3a   :  { %2036 = vrot.lane.b32.xlu1 %v2035_v17, %s2156_s3 }
 0xbac   :  { %v1050_v41 = vpop.xlane.xlu0 %1049 }
 0xbad   :  { %v1054_v44 = vsub.f32 %v1046_v35, %v1050_v41 }
 0xbae   :  { %v1053_v46 = vpop.xlane.xlu1 %1052 }
 0xbaf   :  { %v1056_v47 = vmul.f32 1.442695, %v1054_v44  ;;  %v1055_v48 = vsub.f32 %v1047_v42, %v1053_v46 }
 0xbb1   :  { %2103 = vpow2.f32 %v1056_v47  ;;  %v1058_v45 = vmul.f32 1.442695, %v1055_v48 }
 0xbb2   :  { %v1121_v49 = vpop.permute.xlu1 %1120 }
 0xbb3   :  { %2105 = vpow2.f32 %v1058_v45  ;;  %v1126_v50 = vsel %vm404_vm13, %v1121_v49, 0 }
 0xbb4   :  { %1952 = vmatpush3.bf16.msra.mxu0 %v1126_v50  ;;  %v2049_v50 = vld [vmem:[%s2613_s12] sm:$0xff]  }
 0xbb5   :  { %1965 = vmatprep.subr.bf16.mxu0 %v2141_v52 }
 0xbb6   :  { %v2032_v8 = vpop.permute.xlu1 %2031 }
 0xbb7   :  { %v2034_v10 = vunpack.i.h.bf16 %v2032_v8  ;;  %v2033_v11 = vunpack.i.l.bf16 %v2032_v8 }
 0xbb9   :  { %v1193_v16 = vsel %vm263_vm10, %v2374_v27, %v2034_v10  ;;  %v1192_v17 = vsel %vm263_vm10, %v2372_v22, %v2033_v11  ;;  %v2051_v11 = vld [vmem:[%s2616_s14] sm:$0xff]  }
 0xbba   :  { %v2037_v9 = vpop.permute.xlu1 %2036 }
 0xbbb   :  { %v2104_v26 = vpop.eup %2103  ;;  %v2039_v12 = vunpack.i.h.bf16 %v2037_v9  ;;  %v2038_v13 = vunpack.i.l.bf16 %v2037_v9 }
 0xbbc   :  { %v1060_v15 = vsel %vm263_vm10, %v2104_v26, 0.0 }
 0xbbd   :  { %v2106_v19 = vpop.eup %2105  ;;  %1061 = vadd.xlane.f32.xlu0 %v1060_v15  ;;  %v1195_v24 = vsel %vm1194_vm14, %v1192_v17, %v2038_v13  ;;  %v1196_v25 = vsel %vm1194_vm14, %v1193_v16, %v2039_v12  ;;  %v2052_v12 = vld [vmem:[%s2616_s14 + $0x8] sm:$0xff]   ;;  %v2053_v13 = vld [vmem:[%s2616_s14 + $0x10] sm:$0xff]   ;;  %v2055_v16 = vld [vmem:[%s2616_s14 + $0x20] sm:$0xff]  }
 0xbbe   :  { %v1063_v20 = vsel %vm263_vm10, %v2106_v19, 0.0  ;;  %v2056_v17 = vld [vmem:[%s2616_s14 + $0x28] sm:$0xff]  }
 0xbc1   :  { %1064 = vadd.xlane.f32.xlu0 %v1063_v20 }
 0xbd7   :  { %1072 = vrot.lane.b32.xlu0 %v2312_v23, %s2154_s2 }
 0xc4a   :  { %v1062_v51 = vpop.xlane.xlu0 %1061 }
 0xc4b   :  { %2107 = vrcp.f32 %v1062_v51 }
 0xc4e   :  { %v1065_v53 = vpop.xlane.xlu0 %1064 }
 0xc4f   :  { %2109 = vrcp.f32 %v1065_v53 }
 0xc52   :  { %v1073_v54 = vpop.permute.xlu0 %1072 }
 0xc53   :  { %v1078_v55 = vsel %vm404_vm13, %v1073_v54, 0 }
 0xc54   :  { %1946 = vmatpush3.bf16.msra.mxu1 %v1078_v55 }
 0xc55   :  { %v2108_v56 = vpop.eup %2107  ;;  %1957 = vmatprep.subr.bf16.mxu1 %v2141_v52 }
 0xc56   :  { %v1068_v57 = vmul.f32 %v2108_v56, %v2104_v26  ;;  %v2050_v26 = vld [vmem:[%s2613_s12 + $0x8] sm:$0xff]  }
 0xc58   :  { %v1070_v58 = vpack.c.bf16 %v1068_v57, %v1068_v57 }
 0xc59   :  { %v2110_v59 = vpop.eup %2109 }
 0xc5a   :  { %v1069_v60 = vmul.f32 %v2110_v59, %v2106_v19  ;;  %1948 = vmatmul.mubr.msk.bf16.vlgmr.msra.gmra.mrb[28].mxu1 %vm263_vm10, %v1070_v58 }
 0xc5b   :  { %1961 = vmatprep.mubr.msk.bf16.mxu1 %vm2142_vm5, %v2141_v52  ;;  %1958 = vmatpush3.bf16.msra.mxu1 %v2047_v61 }
 0xc5c   :  { %v1071_v23 = vpack.c.bf16 %v1069_v60, %v1069_v60  ;;  %1959 = vmatprep.subr.bf16.mxu1 %v2141_v52 }
 0xc5e   :  { %1954 = vmatmul.mubr.msk.bf16.vlgmr.msra.gmra.mrb[32].mxu0 %vm263_vm10, %v1071_v23 }
 0xc5f   :  { %1969 = vmatprep.mubr.msk.bf16.mxu0 %vm2142_vm5, %v2141_v52  ;;  %1960 = vmatpush3.bf16.msra.mxu1 %v2048_v62 }
 0xc60   :  { %1973 = vmatprep.subr.bf16.mxu1 %v2141_v52  ;;  %1966 = vmatpush3.bf16.msra.mxu0 %v2049_v50 }
 0xc61   :  { %1967 = vmatprep.subr.bf16.mxu0 %v2141_v52 }
 0xc64   :  { %1968 = vmatpush3.bf16.msra.mxu0 %v2050_v26 }
 0xc65   :  { %1993 = vmatprep.subr.bf16.mxu0 %v2141_v52 }
 0xd2d   :  { %v1114_v63 = vpop.f32.mrb[28].mxu1 }
 0xd2e   :  { %v1949_v0 = vpop.f32.mrb[29].mxu1 }
 0xd2f   :  { %v1117_v1 = vpop.f32.mrb[30].mxu1  ;;  %v1768_v0 = vld [vmem:[%s2614_s10] ss:$0 sm:$0xff] }
 0xd30   :  { %v1950_v2 = vpop.f32.mrb[31].mxu1 }
 0xd31   :  { %v1162_v3 = vpop.f32.mrb[32].mxu0 }
 0xd32   :  { %v2040_v4 = vpack.i.bf16 %v1162_v3, %v1114_v63  ;;  %v1955_v5 = vpop.f32.mrb[33].mxu0 }
 0xd33   :  { %v1165_v6 = vpop.f32.mrb[34].mxu0 }
 0xd34   :  { %2041 = vrot.lane.b32.xlu0 %v2040_v4, %s2157_s24  ;;  %v1956_v7 = vpop.f32.mrb[35].mxu0  ;;  %v1769_v6 = vld [vmem:[%s2615_s11] ss:$0 sm:$0xff] }
 0xda6   :  { %v2042_v14 = vpop.permute.xlu0 %2041 }
 0xda7   :  { %v2044_v18 = vunpack.i.h.bf16 %v2042_v14  ;;  %v2043_v21 = vunpack.i.l.bf16 %v2042_v14  ;;  %v2054_v14 = vld [vmem:[%s2616_s14 + $0x18] sm:$0xff]  }
 0xda9   :  { %v1199_v28 = vsel %vm1197_vm15, %v1196_v25, %v2044_v18  ;;  %v1198_v29 = vsel %vm1197_vm15, %v1195_v24, %v2043_v21  ;;  %v2057_v18 = vld [vmem:[%s2616_s14 + $0x30] sm:$0xff]   ;;  %v2058_v21 = vld [vmem:[%s2616_s14 + $0x38] sm:$0xff]   ;;  %v1770_v24 = vld [vmem:[%s2617_s13] ss:$0 sm:$0xff] }
 0xdaa   :  { %v1204_v30 = vpack.c.bf16 %v1199_v28, %v1198_v29 }
 0xdac   :  { %1962 = vmatmul.mubr.msk.bf16.vlgmr.msra.gmra.mrb[32].mxu1 %vm65_vm0, %v1204_v30 }
 0xdad   :  { %1989 = vmatprep.mubr.msk.bf16.mxu1 %vm2142_vm5, %v2141_v52  ;;  %1974 = vmatpush3.bf16.msra.mxu1 %v2051_v11 }
 0xdae   :  { %1975 = vmatprep.subr.bf16.mxu1 %v2141_v52 }
 0xdb1   :  { %1976 = vmatpush3.bf16.msra.mxu1 %v2052_v12 }
 0xdb2   :  { %1977 = vmatprep.subr.bf16.mxu1 %v2141_v52 }
 0xdb5   :  { %1978 = vmatpush3.bf16.msra.mxu1 %v2053_v13 }
 0xdb6   :  { %1979 = vmatprep.subr.bf16.mxu1 %v2141_v52 }
 0xdb9   :  { %1980 = vmatpush3.bf16.msra.mxu1 %v2054_v14 }
 0xdba   :  { %1981 = vmatprep.subr.bf16.mxu1 %v2141_v52 }
 0xdbd   :  { %1982 = vmatpush3.bf16.msra.mxu1 %v2055_v16 }
 0xdbe   :  { %1983 = vmatprep.subr.bf16.mxu1 %v2141_v52 }
 0xdc1   :  { %1984 = vmatpush3.bf16.msra.mxu1 %v2056_v17 }
 0xdc2   :  { %1985 = vmatprep.subr.bf16.mxu1 %v2141_v52 }
 0xdc5   :  { %1986 = vmatpush3.bf16.msra.mxu1 %v2057_v18 }
 0xdc6   :  { %1987 = vmatprep.subr.bf16.mxu1 %v2141_v52 }
 0xdc9   :  { %1988 = vmatpush3.bf16.msra.mxu1 %v2058_v21 }
 0xe7f   :  { %v1261_v27 = vpop.f32.mrb[32].mxu1 }
 0xe80   :  { %v1262_v32 = vadd.f32 %v1764_v31, %v1261_v27  ;;  %v1963_v33 = vpop.f32.mrb[33].mxu1 }
 0xe81   :  { %v1264_v22 = vpop.f32.mrb[34].mxu1 }
 0xe82   :  { %v2486_v34 = vadd.f32 %v1262_v32, %v2274_v36  ;;  %v1265_v35 = vadd.f32 %v1764_v31, %v1264_v22  ;;  %v1964_v37 = vpop.f32.mrb[35].mxu1 }
 0xe84   :  { %v2489_v38 = vadd.f32 %v1265_v35, %v2278_v40  ;;  %v1270_v39 = vsel %vm65_vm0, %v2486_v34, 0.0 }
 0xe85   :  { %1271 = vadd.xlane.f32.xlu1 %v1270_v39 }
 0xe86   :  { %v1273_v42 = vsel %vm65_vm0, %v2489_v38, 0.0 }
 0xe87   :  { %1274 = vadd.xlane.f32.xlu0 %v1273_v42 }
 0xf12   :  { %v1272_v43 = vpop.xlane.xlu1 %1271 }
 0xf13   :  { %v1276_v41 = vmul.f32 0.03125, %v1272_v43 }
 0xf14   :  { %v1275_v44 = vpop.xlane.xlu0 %1274 }
 0xf15   :  { %v1278_v46 = vsub.f32 %v2486_v34, %v1276_v41  ;;  %v1277_v36 = vmul.f32 0.03125, %v1275_v44 }
 0xf17   :  { %v1279_v47 = vsub.f32 %v2489_v38, %v1277_v36  ;;  %v1280_v48 = vmul.f32 %v1278_v46, %v1278_v46  ;;  %v1297_v2 = vmul.f32 %v1768_v0, %v1278_v46 }
 0xf19   :  { %v1282_v40 = vsel %vm65_vm0, %v1280_v48, 0.0  ;;  %v1281_v45 = vmul.f32 %v1279_v47, %v1279_v47  ;;  %v1298_v3 = vmul.f32 %v1768_v0, %v1279_v47 }
 0xf1a   :  { %1283 = vadd.xlane.f32.xlu0 %v1282_v40 }
 0xf1b   :  { %v1285_v49 = vsel %vm65_vm0, %v1281_v45, 0.0 }
 0xf1e   :  { %1286 = vadd.xlane.f32.xlu0 %v1285_v49 }
 0xfa7   :  { %v1284_v15 = vpop.xlane.xlu0 %1283 }
 0xfa8   :  { %v1288_v19 = vmul.f32 0.032258064, %v1284_v15  ;;  %v2059_v15 = vld [vmem:[%s2618_s17] sm:$0xff]  }
 0xfaa   :  { %2111 = vrsqrt.f32 %v1288_v19  ;;  %vm1301_vm1 = vcmp.eq.f32.partialorder %v1288_v19, inf  ;;  %v1304_v55 = vand.u32 2147483648, %v1288_v19  ;;  %vm1303_vm2 = vcmp.eq.f32.partialorder %v1288_v19, 0.0 }
 0xfab   :  { %v1287_v20 = vpop.xlane.xlu0 %1286 }
 0xfac   :  { %v1289_v51 = vmul.f32 0.032258064, %v1287_v20  ;;  %v1774_v20 = vld [vmem:[%s2619_s15] ss:$0 sm:$0xff] }
 0xfae   :  { %2113 = vrsqrt.f32 %v1289_v51  ;;  %vm1308_vm3 = vcmp.eq.f32.partialorder %v1289_v51, inf  ;;  %v1311_v23 = vand.u32 2147483648, %v1289_v51  ;;  %vm1310_vm4 = vcmp.eq.f32.partialorder %v1289_v51, 0.0 }
 0xfb4   :  { %v2112_v53 = vpop.eup %2111 }
 0xfb5   :  { %v1300_v54 = vmul.f32 %v2112_v53, %v1288_v19 }
 0xfb7   :  { %v1302_v56 = vsel %vm1301_vm1, %v1288_v19, %v1300_v54  ;;  %v2060_v19 = vld [vmem:[%s2618_s17 + $0x8] sm:$0xff]  }
 0xfb8   :  { %v2114_v57 = vpop.eup %2113  ;;  %v1305_v58 = vsel %vm1303_vm2, %v1304_v55, %v1302_v56 }
 0xfb9   :  { %v1313_v59 = vadd.f32 1e-06, %v1305_v58  ;;  %v1307_v60 = vmul.f32 %v2114_v57, %v1289_v51 }
 0xfbb   :  { %2115 = vrcp.f32 %v1313_v59  ;;  %v1309_v61 = vsel %vm1308_vm3, %v1289_v51, %v1307_v60  ;;  %v2139_v60 = vld [vmem:[%s2629_s20] sm:$0xff] }
 0xfbc   :  { %v1312_v62 = vsel %vm1310_vm4, %v1311_v23, %v1309_v61  ;;  %v2140_v61 = vld [vmem:[%s2629_s20 + $0x8] sm:$0xff] }
 0xfbd   :  { %v1314_v63 = vadd.f32 1e-06, %v1312_v62 }
 0xfbf   :  { %2117 = vrcp.f32 %v1314_v63 }
 0xfc5   :  { %v2116_v1 = vpop.eup %2115 }
 0xfc6   :  { %v1316_v4 = vmul.f32 %v2116_v1, %v1297_v2 }
 0xfc8   :  { %v1326_v8 = vadd.f32 %v1769_v6, %v1316_v4 }
 0xfc9   :  { %v2118_v5 = vpop.eup %2117 }
 0xfca   :  { %v1318_v7 = vmul.f32 %v2118_v5, %v1298_v3  ;;  %v2061_v5 = vld [vmem:[%s2620_s16] sm:$0xff]  }
 0xfcc   :  { %v1327_v9 = vadd.f32 %v1769_v6, %v1318_v7  ;;  %v2062_v7 = vld [vmem:[%s2620_s16] sm:$0xff]  }
 0xfce   :  { %v1332_v10 = vpack.c.bf16 %v1327_v9, %v1326_v8  ;;  %v1595_v8 = vld [vmem:[%s2621_s18] sm:$0xff] }
 0xfd0   :  { %1970 = vmatmul.mubr.msk.bf16.vlgmr.msra.gmra.mrb[36].mxu0 %vm65_vm0, %v1332_v10  ;;  %v1596_v10 = vld [vmem:[%s2621_s18 + $0x8] sm:$0xff] }
 0xfd1   :  { %1997 = vmatprep.mubr.msk.bf16.mxu0 %vm2142_vm5, %v2141_v52  ;;  %1994 = vmatpush3.bf16.msra.mxu0 %v2059_v15 }
 0xfd2   :  { %1995 = vmatprep.subr.bf16.mxu0 %v2141_v52 }
 0xfd5   :  { %1996 = vmatpush3.bf16.msra.mxu0 %v2060_v19 }
 0xfd6   :  { %2001 = vmatprep.subr.bf16.mxu0 %v2141_v52 }
0x10a3   :  { %v1389_v25 = vpop.f32.mrb[36].mxu0 }
0x10a4   :  { %v1390_v28 = vadd.f32 %v1770_v24, %v1389_v25  ;;  %v1971_v29 = vpop.f32.mrb[37].mxu0 }
0x10a5   :  { %v1392_v30 = vpop.f32.mrb[38].mxu0 }
0x10a6   :  { %v1398_v31 = vmul.f32 %v1390_v28, %v1390_v28  ;;  %v1393_v27 = vadd.f32 %v1770_v24, %v1392_v30  ;;  %v1972_v32 = vpop.f32.mrb[39].mxu0  ;;  %v1396_v48 = vmul.f32 0.5, %v1390_v28 }
0x10a8   :  { %v1400_v33 = vmul.f32 %v1398_v31, %v1390_v28  ;;  %v1399_v22 = vmul.f32 %v1393_v27, %v1393_v27  ;;  %v1397_v40 = vmul.f32 0.5, %v1393_v27 }
0x10aa   :  { %v1402_v35 = vmul.f32 0.044715, %v1400_v33  ;;  %v1401_v37 = vmul.f32 %v1399_v22, %v1393_v27 }
0x10ac   :  { %v1404_v39 = vadd.f32 %v1402_v35, %v1390_v28  ;;  %v1403_v42 = vmul.f32 0.044715, %v1401_v37 }
0x10ae   :  { %v1406_v43 = vmul.f32 0.7978846, %v1404_v39  ;;  %v1405_v41 = vadd.f32 %v1403_v42, %v1393_v27 }
0x10b0   :  { %2119 = vtanh.f32 %v1406_v43  ;;  %v1407_v44 = vmul.f32 0.7978846, %v1405_v41 }
0x10b2   :  { %2121 = vtanh.f32 %v1407_v44 }
0x10ba   :  { %v2120_v46 = vpop.eup %2119 }
0x10bb   :  { %v1410_v36 = vadd.f32 1.0, %v2120_v46 }
0x10bc   :  { %v2122_v47 = vpop.eup %2121 }
0x10bd   :  { %v1411_v45 = vadd.f32 1.0, %v2122_v47  ;;  %v1412_v49 = vmul.f32 %v1410_v36, %v1396_v48 }
0x10bf   :  { %v1413_v50 = vmul.f32 %v1411_v45, %v1397_v40 }
0x10c1   :  { %v1430_v26 = vpack.c.bf16 %v1413_v50, %v1412_v49 }
0x10c3   :  { %1990 = vmatmul.mubr.bf16.vlgmr.msra.gmra.mrb[36].mxu1 %v1430_v26 }
0x1196   :  { %v1520_v51 = vpop.f32.mrb[36].mxu1 }
0x1197   :  { %v1521_v53 = vadd.f32 %v1774_v20, %v1520_v51  ;;  %v1991_v54 = vpop.f32.mrb[37].mxu1 }
0x1198   :  { %v1523_v55 = vpop.f32.mrb[38].mxu1 }
0x1199   :  { %v1527_v56 = vadd.f32 %v1521_v53, %v2486_v34  ;;  %v1524_v57 = vadd.f32 %v1774_v20, %v1523_v55  ;;  %v1992_v58 = vpop.f32.mrb[39].mxu1 }
0x119b   :  { %v1528_v59 = vadd.f32 %v1524_v57, %v2489_v38  ;;  %v1529_v23 = vadd.f32 %v2139_v60, %v1527_v56 }
0x119d   :  { %v1530_v62 = vadd.f32 %v2140_v61, %v1528_v59 }
0x119f   :  { %v1535_v63 = vpack.c.bf16 %v1530_v62, %v1529_v23 }
0x11a1   :  { %1998 = vmatmul.mubr.msk.bf16.vlgmr.msra.gmra.mrb[40].mxu0 %vm65_vm0, %v1535_v63  ;;  %vm1661_vm0 = vcmask 7168  }
0x11a2   :  { %2003 = vmatprep.mubr.msk.bf16.mxu0 %vm2142_vm5, %v2141_v52 }
0x1274   :  { %v1585_v34 = vpop.f32.mrb[40].mxu0 }
0x1275   :  { %v1594_v0 = vpack.c.bf16 %v1585_v34, %v1585_v34  ;;  %v1999_v1 = vpop.f32.mrb[41].mxu0 }
0x1276   :  { %v1588_v38 = vpop.f32.mrb[42].mxu0 }
0x1277   :  { %v1606_v2 = vsel %vm404_vm13, %v1594_v0, 0  ;;  %v1666_v3 = vpack.c.bf16 %v1588_v38, %v1588_v38  ;;  %v2000_v4 = vpop.f32.mrb[43].mxu0 }
0x1278   :  { %2002 = vmatpush3.bf16.msra.mxu0 %v1606_v2 }
0x1279   :  { %2007 = vmatprep.subr.bf16.mxu0 %v2141_v52  ;;  %v1678_v6 = vsel %vm404_vm13, %v1666_v3, 0 }
0x127b   :  { %2004 = vmatmul.mubr.msk.bf16.vlgmr.msra.gmra.mrb[44].mxu0 %vm263_vm10, %v2061_v5 }
0x127c   :  { %2008 = vmatpush3.bf16.msra.mxu0 %v1678_v6  ;;  %2009 = vmatprep.mubr.msk.bf16.mxu0 %vm2142_vm5, %v2141_v52 }
0x1283   :  { %2010 = vmatmul.mubr.msk.bf16.vlgmr.msra.gmra.mrb[48].mxu0 %vm263_vm10, %v2062_v7 }
0x134e   :  { %v1642_v9 = vpop.f32.mrb[44].mxu0 }
0x134f   :  { %v1643_v11 = vadd.f32 %v1642_v9, %v1595_v8  ;;  %v2005_v12 = vpop.f32.mrb[45].mxu0 }
0x1350   :  { %v1645_v13 = vpop.f32.mrb[46].mxu0 }
0x1351   :  { %v1788_v14 = vmul.f32 -1.442695, %v1643_v11  ;;  %v1646_v52 = vadd.f32 %v1645_v13, %v1596_v10  ;;  %v2006_v16 = vpop.f32.mrb[47].mxu0 }
0x1353   :  { %2123 = vpow2.f32 %v1788_v14  ;;  %v1789_v17 = vmul.f32 -1.442695, %v1646_v52 }
0x1355   :  { %2125 = vpow2.f32 %v1789_v17 }
0x1356   :  { %v1714_v18 = vpop.f32.mrb[48].mxu0 }
0x1357   :  { %v1715_v21 = vadd.f32 %v1714_v18, %v1595_v8  ;;  %v2011_v24 = vpop.f32.mrb[49].mxu0 }
0x1358   :  { %v1717_v25 = vpop.f32.mrb[50].mxu0 }
0x1359   :  { %v1792_v28 = vmul.f32 -1.442695, %v1715_v21  ;;  %v1718_v29 = vadd.f32 %v1717_v25, %v1596_v10  ;;  %v2012_v30 = vpop.f32.mrb[51].mxu0 }
0x135b   :  { %2127 = vpow2.f32 %v1792_v28  ;;  %v1793_v31 = vmul.f32 -1.442695, %v1718_v29 }
0x135d   :  { %v2124_v27 = vpop.eup %2123  ;;  %2129 = vpow2.f32 %v1793_v31 }
0x135e   :  { %v1655_v32 = vadd.f32 1.0, %v2124_v27 }
0x135f   :  { %v2126_v33 = vpop.eup %2125 }
0x1360   :  { %2131 = vrcp.f32 %v1655_v32  ;;  %v1656_v22 = vadd.f32 1.0, %v2126_v33 }
0x1362   :  { %2133 = vrcp.f32 %v1656_v22 }
0x1365   :  { %v2128_v35 = vpop.eup %2127 }
0x1366   :  { %v1727_v37 = vadd.f32 1.0, %v2128_v35 }
0x1367   :  { %v2130_v39 = vpop.eup %2129 }
0x1368   :  { %2135 = vrcp.f32 %v1727_v37  ;;  %v1728_v42 = vadd.f32 1.0, %v2130_v39 }
0x136a   :  { %v2132_v43 = vpop.eup %2131  ;;  %2137 = vrcp.f32 %v1728_v42 }
0x136b   :  { %1662 = vst.msk [vmem:[%s2622_s19] sm:$0xff] %vm1661_vm0, %v2132_v43 }
0x136c   :  { %v2134_v41 = vpop.eup %2133 }
0x136d   :  { %1663 = vst.msk [vmem:[%s2622_s19 + $0x8] sm:$0xff] %vm1661_vm0, %v2134_v41 }
0x1372   :  { %v2136_v44 = vpop.eup %2135 }
0x1373   :  { %1794 = vst.msk [vmem:[%s2622_s19 + $0x10] sm:$0xff] %vm1661_vm0, %v2136_v44 }
0x1374   :  { %v2138_v46 = vpop.eup %2137 }
0x1375   :  { %1795 = vst.msk [vmem:[%s2622_s19 + $0x18] sm:$0xff] %vm1661_vm0, %v2138_v46 }

</bundles_post_ra>
